<compile_context>
chip_gen: v7x
topology: tpu7x:2x2x1
jax: 0.10.0
libtpu: 0.0.40
codegen_flags: <defaults>
</compile_context>

<pallas_src>
import functools

import jax
import jax.numpy as jnp
from jax.experimental import pallas as pl
from jax.experimental.pallas import tpu as pltpu

# ---------------- model config (small, consistent with a ViT forward) ---------------
BATCH = 2
CHANNELS = 3
IMG = 16
PATCH = 8
HIDDEN = 32
HEADS = 4
HEAD_DIM = HIDDEN // HEADS
MLP = 64
LAYERS = 2
LN_EPS = 1e-12                     # HF ViT layer_norm_eps
SEQ = (IMG // PATCH) ** 2 + 1      # patches + CLS


# ------------------------------- in-kernel helpers -----------------------------------
def _layernorm(x, g, b):
    mu = jnp.mean(x, axis=-1, keepdims=True)
    xc = x - mu
    var = jnp.mean(xc * xc, axis=-1, keepdims=True)
    return xc * jax.lax.rsqrt(var + LN_EPS) * g + b


def _erf(x):
    # Abramowitz & Stegun 7.1.26 polynomial erf (max abs err ~1.5e-7).
    # Reciprocal via pl.reciprocal (EUP) instead of a multi-op VPU divide.
    p = 0.3275911
    a1, a2, a3, a4, a5 = 0.254829592, -0.284496736, 1.421413741, -1.453152027, 1.061405429
    ax = jnp.abs(x)
    t = pl.reciprocal(1.0 + p * ax, approx=False)
    poly = ((((a5 * t + a4) * t + a3) * t + a2) * t + a1) * t
    y = 1.0 - poly * jnp.exp(-ax * ax)
    return jnp.where(x >= 0.0, y, -y)


def _gelu_exact(x):
    # Exact erf GELU (HF ViT hidden_act='gelu'), via the polynomial erf above.
    return 0.5 * x * (1.0 + _erf(x * 0.7071067811865476))


# ------------------------------- fused ViT kernel ------------------------------------
def _vit_fused_kernel(
    # per-batch patch rows + shared embedding table / patch projection
    patches_ref, emb_add_ref, patch_w_ref,
    # stacked per-layer params (static layer index inside the unrolled loop)
    ln1_g_ref, ln1_b_ref,
    wq_ref, bq_ref, wk_ref, bk_ref, wv_ref, bv_ref, wo_ref, bo_ref,
    ln2_g_ref, ln2_b_ref, w1_ref, b1_ref, w2_ref, b2_ref,
    # final LN + pooler params
    lnf_g_ref, lnf_b_ref, pool_w_ref, pool_b_ref,
    # output
    out_ref,
    *, layers, heads, seq,
):
    bf16 = jnp.bfloat16
    dn_bmm_nt = (((2,), (2,)), ((0,), (0,)))   # (H,S,D) x (H,S,D)  -> (H,S,S)
    dn_bmm_nn = (((2,), (1,)), ((0,), (0,)))   # (H,S,K) x (H,K,N)  -> (H,S,N)

    # ---- patch embedding: row 0 is a zero CLS placeholder; emb_add carries
    #      cls+pos[0] on row 0 and patch_b+pos[1:] on the rest (built in wrapper).
    x = jnp.dot(patches_ref[...], patch_w_ref[...],
                preferred_element_type=jnp.float32) + emb_add_ref[...]   # (S, HIDDEN) f32

    for l in range(layers):                       # fully unrolled (toy LAYERS=2)
        # ---------------- attention (head-batched, no lane slices) ----------------
        h = _layernorm(x, ln1_g_ref[l], ln1_b_ref[l])
        hb = jnp.broadcast_to(h.astype(bf16)[None], (heads, seq, h.shape[-1]))

        q = jax.lax.dot_general(hb, wq_ref[l], dn_bmm_nn,
                                preferred_element_type=jnp.float32) + bq_ref[l]
        k = jax.lax.dot_general(hb, wk_ref[l], dn_bmm_nn,
                                preferred_element_type=jnp.float32) + bk_ref[l]
        v = jax.lax.dot_general(hb, wv_ref[l], dn_bmm_nn,
                                preferred_element_type=jnp.float32) + bv_ref[l]

        # scores (scale 1/sqrt(D) already folded into wq/bq in the wrapper)
        s = jax.lax.dot_general(q.astype(bf16), k.astype(bf16), dn_bmm_nt,
                                preferred_element_type=jnp.float32)      # (H, S, S)
        m = jnp.max(s, axis=-1, keepdims=True)
        e = jnp.exp(s - m)
        p = e * pl.reciprocal(jnp.sum(e, axis=-1, keepdims=True), approx=True)

        ctx = jax.lax.dot_general(p.astype(bf16), v.astype(bf16), dn_bmm_nn,
                                  preferred_element_type=jnp.float32)    # (H, S, D)
        # per-head output projection; sum over heads == concat-heads-then-Wo (exact)
        ao = jax.lax.dot_general(ctx.astype(bf16), wo_ref[l], dn_bmm_nn,
                                 preferred_element_type=jnp.float32)     # (H, S, HIDDEN)
        x = x + jnp.sum(ao, axis=0) + bo_ref[l]

        # ---------------- MLP (pre-LN) with exact-erf GELU ----------------
        h2 = _layernorm(x, ln2_g_ref[l], ln2_b_ref[l])
        y = jnp.dot(h2.astype(bf16), w1_ref[l],
                    preferred_element_type=jnp.float32) + b1_ref[l]
        y = _gelu_exact(y)
        y = jnp.dot(y.astype(bf16), w2_ref[l],
                    preferred_element_type=jnp.float32) + b2_ref[l]
        x = x + y

    # ---- final LayerNorm on the CLS row only, then pooler: tanh(Linear(.)) ----
    cn = _layernorm(x[0:1, :], lnf_g_ref[...], lnf_b_ref[...])
    pooled = jnp.tanh(jnp.dot(cn.astype(bf16), pool_w_ref[...],
                              preferred_element_type=jnp.float32) + pool_b_ref[...])
    out_ref[...] = pooled                                                # (1, HIDDEN)


# ------------------------------- parameter init --------------------------------------
def init_params(key):
    def nrm(k, shape, scale=0.02):
        return scale * jax.random.normal(k, shape, dtype=jnp.float32)

    keys = iter(jax.random.split(key, 12))
    return {
        "patch_w": nrm(next(keys), (CHANNELS * PATCH * PATCH, HIDDEN)),
        "patch_b": jnp.zeros((1, HIDDEN), jnp.float32),
        "cls": nrm(next(keys), (1, HIDDEN)),
        "pos": nrm(next(keys), (SEQ, HIDDEN)),
        "lnf_g": jnp.ones((1, HIDDEN), jnp.float32),
        "lnf_b": jnp.zeros((1, HIDDEN), jnp.float32),
        "pool_w": nrm(next(keys), (HIDDEN, HIDDEN)),
        "pool_b": jnp.zeros((1, HIDDEN), jnp.float32),
        # per-layer weights stacked on a leading LAYERS axis
        "stk": {
            "ln1_g": jnp.ones((LAYERS, 1, HIDDEN), jnp.float32),
            "ln1_b": jnp.zeros((LAYERS, 1, HIDDEN), jnp.float32),
            "wq": nrm(next(keys), (LAYERS, HIDDEN, HIDDEN)),
            "bq": jnp.zeros((LAYERS, 1, HIDDEN), jnp.float32),
            "wk": nrm(next(keys), (LAYERS, HIDDEN, HIDDEN)),
            "bk": jnp.zeros((LAYERS, 1, HIDDEN), jnp.float32),
            "wv": nrm(next(keys), (LAYERS, HIDDEN, HIDDEN)),
            "bv": jnp.zeros((LAYERS, 1, HIDDEN), jnp.float32),
            "wo": nrm(next(keys), (LAYERS, HIDDEN, HIDDEN)),
            "bo": jnp.zeros((LAYERS, 1, HIDDEN), jnp.float32),
            "ln2_g": jnp.ones((LAYERS, 1, HIDDEN), jnp.float32),
            "ln2_b": jnp.zeros((LAYERS, 1, HIDDEN), jnp.float32),
            "w1": nrm(next(keys), (LAYERS, HIDDEN, MLP)),
            "b1": jnp.zeros((LAYERS, 1, MLP), jnp.float32),
            "w2": nrm(next(keys), (LAYERS, MLP, HIDDEN)),
            "b2": jnp.zeros((LAYERS, 1, HIDDEN), jnp.float32),
        },
    }


# ------------------------------- forward pass ----------------------------------------
def foundational_cv_model_forward(params, images):
    """FoundationalCVModel(backbone='vit_base').forward -> ViT pooler_output."""
    B, C, H, W = images.shape
    p = PATCH
    Hp, Wp = H // p, W // p
    Np = Hp * Wp
    S = Np + 1
    PD = C * p * p
    bf16 = jnp.bfloat16
    scale = HEAD_DIM ** -0.5

    # stride-P conv == per-patch flatten in (c, ph, pw) order (nn.Conv2d layout) + matmul.
    patches = (images.reshape(B, C, Hp, p, Wp, p)
               .transpose(0, 2, 4, 1, 3, 5)
               .reshape(B, Np, PD))
    # Row 0 = zero CLS placeholder; CLS token / pos-emb / patch bias are folded into a
    # single additive table so the kernel needs no concatenate at all.
    patches = jnp.concatenate([jnp.zeros((B, 1, PD), jnp.float32), patches], axis=1)
    patches = patches.astype(bf16)                                  # (B, S, PD)
    emb_add = jnp.concatenate(
        [params["cls"] + params["pos"][0:1, :],
         params["patch_b"] + params["pos"][1:, :]], axis=0)         # (S, HIDDEN) f32

    stk = params["stk"]
    L = LAYERS

    # Wrapper-side head re-layout (one-time XLA): per-head weights so the kernel's
    # attention is pure batch-dim-0 dot_generals with zero lane slicing.
    def head_in(w):    # (L, HIDDEN, HIDDEN) -> (L, HEADS, HIDDEN, HEAD_DIM)
        return w.reshape(L, HIDDEN, HEADS, HEAD_DIM).transpose(0, 2, 1, 3)

    def head_bias(b):  # (L, 1, HIDDEN) -> (L, HEADS, 1, HEAD_DIM)
        return b.reshape(L, 1, HEADS, HEAD_DIM).transpose(0, 2, 1, 3)

    wq = (head_in(stk["wq"]) * scale).astype(bf16)   # attention scale folded in
    bq = head_bias(stk["bq"]) * scale
    wk = head_in(stk["wk"]).astype(bf16)
    bk = head_bias(stk["bk"])
    wv = head_in(stk["wv"]).astype(bf16)
    bv = head_bias(stk["bv"])
    wo = stk["wo"].reshape(L, HEADS, HEAD_DIM, HIDDEN).astype(bf16)

    in_arrays = [
        patches, emb_add, params["patch_w"].astype(bf16),
        stk["ln1_g"], stk["ln1_b"],
        wq, bq, wk, bk, wv, bv, wo, stk["bo"],
        stk["ln2_g"], stk["ln2_b"],
        stk["w1"].astype(bf16), stk["b1"], stk["w2"].astype(bf16), stk["b2"],
        params["lnf_g"], params["lnf_b"], params["pool_w"].astype(bf16), params["pool_b"],
    ]

    def resident(a):   # whole array resident in VMEM, same block every grid step
        zeros = (0,) * a.ndim
        return pl.BlockSpec(a.shape, lambda b, _z=zeros: _z)

    in_specs = ([pl.BlockSpec((None, S, PD), lambda b: (b, 0, 0))] +
                [resident(a) for a in in_arrays[1:]])

    kernel = functools.partial(_vit_fused_kernel, layers=L, heads=HEADS, seq=S)

    out = pl.pallas_call(
        kernel,
        out_shape=jax.ShapeDtypeStruct((B, 1, HIDDEN), jnp.float32),
        grid=(B,),                                   # batch-parallel (2 TCs on v7x)
        in_specs=in_specs,
        out_specs=pl.BlockSpec((None, 1, HIDDEN), lambda b: (b, 0, 0)),
        compiler_params=pltpu.CompilerParams(dimension_semantics=("parallel",)),
    )(*in_arrays)
    return out.reshape(B, HIDDEN)                    # == ViT 'pooler_output'


# ------------------------------------- main -------------------------------------------
if __name__ == "__main__":
    key = jax.random.PRNGKey(0)
    k_img, k_par = jax.random.split(key)
    images = jax.random.normal(k_img, (BATCH, CHANNELS, IMG, IMG), dtype=jnp.float32)
    params = init_params(k_par)

    fwd = jax.jit(foundational_cv_model_forward)
    out = fwd(params, images)
    jax.block_until_ready(out)
    assert out.shape == (BATCH, HIDDEN)
    print("KERNEL_OK")
</pallas_src>

<mosaic_0001>
module attributes {stable_mosaic.version = 11 : i64} {
  func.func @_vit_fused_kernel(%arg0: i32, %arg1: memref<1x5x192xbf16, #tpu.memory_space<vmem>>, %arg2: memref<5x32xf32, #tpu.memory_space<vmem>>, %arg3: memref<192x32xbf16, #tpu.memory_space<vmem>>, %arg4: memref<2x1x32xf32, #tpu.memory_space<vmem>>, %arg5: memref<2x1x32xf32, #tpu.memory_space<vmem>>, %arg6: memref<2x4x32x8xbf16, #tpu.memory_space<vmem>>, %arg7: memref<2x4x1x8xf32, #tpu.memory_space<vmem>>, %arg8: memref<2x4x32x8xbf16, #tpu.memory_space<vmem>>, %arg9: memref<2x4x1x8xf32, #tpu.memory_space<vmem>>, %arg10: memref<2x4x32x8xbf16, #tpu.memory_space<vmem>>, %arg11: memref<2x4x1x8xf32, #tpu.memory_space<vmem>>, %arg12: memref<2x4x8x32xbf16, #tpu.memory_space<vmem>>, %arg13: memref<2x1x32xf32, #tpu.memory_space<vmem>>, %arg14: memref<2x1x32xf32, #tpu.memory_space<vmem>>, %arg15: memref<2x1x32xf32, #tpu.memory_space<vmem>>, %arg16: memref<2x32x64xbf16, #tpu.memory_space<vmem>>, %arg17: memref<2x1x64xf32, #tpu.memory_space<vmem>>, %arg18: memref<2x64x32xbf16, #tpu.memory_space<vmem>>, %arg19: memref<2x1x32xf32, #tpu.memory_space<vmem>>, %arg20: memref<1x32xf32, #tpu.memory_space<vmem>>, %arg21: memref<1x32xf32, #tpu.memory_space<vmem>>, %arg22: memref<32x32xbf16, #tpu.memory_space<vmem>>, %arg23: memref<1x32xf32, #tpu.memory_space<vmem>>, %arg24: memref<1x1x32xf32, #tpu.memory_space<vmem>>) attributes {dimension_semantics = [#tpu.dimension_semantics<parallel>], iteration_bounds = array<i64: 2>, scalar_prefetch = 0 : i64, scratch_operands = 0 : i64, tpu.core_type = #tpu.core_type<tc>, window_params = [{transform_indices = @transform_0, window_bounds = array<i64: 1, 5, 192>}, {pipeline_mode = #tpu.pipeline_mode<synchronous>, transform_indices = @transform_1, window_bounds = array<i64: 5, 32>}, {pipeline_mode = #tpu.pipeline_mode<synchronous>, transform_indices = @transform_2, window_bounds = array<i64: 192, 32>}, {pipeline_mode = #tpu.pipeline_mode<synchronous>, transform_indices = @transform_3, window_bounds = array<i64: 2, 1, 32>}, {pipeline_mode = #tpu.pipeline_mode<synchronous>, transform_indices = @transform_4, window_bounds = array<i64: 2, 1, 32>}, {pipeline_mode = #tpu.pipeline_mode<synchronous>, transform_indices = @transform_5, window_bounds = array<i64: 2, 4, 32, 8>}, {pipeline_mode = #tpu.pipeline_mode<synchronous>, transform_indices = @transform_6, window_bounds = array<i64: 2, 4, 1, 8>}, {pipeline_mode = #tpu.pipeline_mode<synchronous>, transform_indices = @transform_7, window_bounds = array<i64: 2, 4, 32, 8>}, {pipeline_mode = #tpu.pipeline_mode<synchronous>, transform_indices = @transform_8, window_bounds = array<i64: 2, 4, 1, 8>}, {pipeline_mode = #tpu.pipeline_mode<synchronous>, transform_indices = @transform_9, window_bounds = array<i64: 2, 4, 32, 8>}, {pipeline_mode = #tpu.pipeline_mode<synchronous>, transform_indices = @transform_10, window_bounds = array<i64: 2, 4, 1, 8>}, {pipeline_mode = #tpu.pipeline_mode<synchronous>, transform_indices = @transform_11, window_bounds = array<i64: 2, 4, 8, 32>}, {pipeline_mode = #tpu.pipeline_mode<synchronous>, transform_indices = @transform_12, window_bounds = array<i64: 2, 1, 32>}, {pipeline_mode = #tpu.pipeline_mode<synchronous>, transform_indices = @transform_13, window_bounds = array<i64: 2, 1, 32>}, {pipeline_mode = #tpu.pipeline_mode<synchronous>, transform_indices = @transform_14, window_bounds = array<i64: 2, 1, 32>}, {pipeline_mode = #tpu.pipeline_mode<synchronous>, transform_indices = @transform_15, window_bounds = array<i64: 2, 32, 64>}, {pipeline_mode = #tpu.pipeline_mode<synchronous>, transform_indices = @transform_16, window_bounds = array<i64: 2, 1, 64>}, {pipeline_mode = #tpu.pipeline_mode<synchronous>, transform_indices = @transform_17, window_bounds = array<i64: 2, 64, 32>}, {pipeline_mode = #tpu.pipeline_mode<synchronous>, transform_indices = @transform_18, window_bounds = array<i64: 2, 1, 32>}, {pipeline_mode = #tpu.pipeline_mode<synchronous>, transform_indices = @transform_19, window_bounds = array<i64: 1, 32>}, {pipeline_mode = #tpu.pipeline_mode<synchronous>, transform_indices = @transform_20, window_bounds = array<i64: 1, 32>}, {pipeline_mode = #tpu.pipeline_mode<synchronous>, transform_indices = @transform_21, window_bounds = array<i64: 32, 32>}, {pipeline_mode = #tpu.pipeline_mode<synchronous>, transform_indices = @transform_22, window_bounds = array<i64: 1, 32>}, {transform_indices = @transform_23, window_bounds = array<i64: 1, 1, 32>}]} {
    %c0 = arith.constant 0 : index
    %c0_0 = arith.constant 0 : index
    %c0_1 = arith.constant 0 : index
    %0 = vector.load %arg1[%c0, %c0_0, %c0_1] : memref<1x5x192xbf16, #tpu.memory_space<vmem>>, vector<1x5x192xbf16>
    %1 = vector.shape_cast %0 : vector<1x5x192xbf16> to vector<5x192xbf16>
    %c0_2 = arith.constant 0 : index
    %c0_3 = arith.constant 0 : index
    %2 = vector.load %arg3[%c0_2, %c0_3] : memref<192x32xbf16, #tpu.memory_space<vmem>>, vector<192x32xbf16>
    %cst = arith.constant dense<0.000000e+00> : vector<5x32xf32>
    %3 = tpu.matmul %1, %2, %cst {dimension_numbers = #tpu.dot_dimension_numbers<[1], [0], [0], [1], [0, 0, 1, 1], [], []>} : vector<5x192xbf16>, vector<192x32xbf16>, vector<5x32xf32> -> vector<5x32xf32>
    %c0_4 = arith.constant 0 : index
    %c0_5 = arith.constant 0 : index
    %4 = vector.load %arg2[%c0_4, %c0_5] : memref<5x32xf32, #tpu.memory_space<vmem>>, vector<5x32xf32>
    %5 = arith.addf %3, %4 : vector<5x32xf32>
    %c0_6 = arith.constant 0 : index
    %c0_7 = arith.constant 0 : index
    %c0_8 = arith.constant 0 : index
    %6 = vector.load %arg4[%c0_6, %c0_7, %c0_8] : memref<2x1x32xf32, #tpu.memory_space<vmem>>, vector<1x1x32xf32>
    %7 = vector.shape_cast %6 : vector<1x1x32xf32> to vector<1x32xf32>
    %c0_9 = arith.constant 0 : index
    %c0_10 = arith.constant 0 : index
    %c0_11 = arith.constant 0 : index
    %8 = vector.load %arg5[%c0_9, %c0_10, %c0_11] : memref<2x1x32xf32, #tpu.memory_space<vmem>>, vector<1x1x32xf32>
    %9 = vector.shape_cast %8 : vector<1x1x32xf32> to vector<1x32xf32>
    %cst_12 = arith.constant dense<0.000000e+00> : vector<5xf32>
    %10 = vector.multi_reduction <add>, %5, %cst_12 [1] : vector<5x32xf32> to vector<5xf32>
    %11 = vector.shape_cast %10 : vector<5xf32> to vector<5x1xf32>
    %cst_13 = arith.constant 3.200000e+01 : f32
    %12 = vector.broadcast %cst_13 : f32 to vector<5x1xf32>
    %13 = arith.divf %11, %12 : vector<5x1xf32>
    %14 = vector.broadcast %13 : vector<5x1xf32> to vector<5x32xf32>
    %15 = arith.subf %5, %14 : vector<5x32xf32>
    %16 = arith.mulf %15, %15 : vector<5x32xf32>
    %cst_14 = arith.constant dense<0.000000e+00> : vector<5xf32>
    %17 = vector.multi_reduction <add>, %16, %cst_14 [1] : vector<5x32xf32> to vector<5xf32>
    %18 = vector.shape_cast %17 : vector<5xf32> to vector<5x1xf32>
    %cst_15 = arith.constant 3.200000e+01 : f32
    %19 = vector.broadcast %cst_15 : f32 to vector<5x1xf32>
    %20 = arith.divf %18, %19 : vector<5x1xf32>
    %cst_16 = arith.constant 9.99999996E-13 : f32
    %21 = vector.broadcast %cst_16 : f32 to vector<5x1xf32>
    %22 = arith.addf %20, %21 : vector<5x1xf32>
    %23 = math.rsqrt %22 : vector<5x1xf32>
    %24 = vector.broadcast %23 : vector<5x1xf32> to vector<5x32xf32>
    %25 = arith.mulf %15, %24 : vector<5x32xf32>
    %26 = vector.broadcast %7 : vector<1x32xf32> to vector<5x32xf32>
    %27 = arith.mulf %25, %26 : vector<5x32xf32>
    %28 = vector.broadcast %9 : vector<1x32xf32> to vector<5x32xf32>
    %29 = arith.addf %27, %28 : vector<5x32xf32>
    %30 = arith.truncf %29 : vector<5x32xf32> to vector<5x32xbf16>
    %31 = vector.shape_cast %30 : vector<5x32xbf16> to vector<1x5x32xbf16>
    %32 = vector.shape_cast %31 : vector<1x5x32xbf16> to vector<1x5x32xbf16>
    %33 = vector.broadcast %32 : vector<1x5x32xbf16> to vector<4x5x32xbf16>
    %c0_17 = arith.constant 0 : index
    %c0_18 = arith.constant 0 : index
    %c0_19 = arith.constant 0 : index
    %c0_20 = arith.constant 0 : index
    %34 = vector.load %arg6[%c0_17, %c0_18, %c0_19, %c0_20] : memref<2x4x32x8xbf16, #tpu.memory_space<vmem>>, vector<1x4x32x8xbf16>
    %35 = vector.shape_cast %34 : vector<1x4x32x8xbf16> to vector<4x32x8xbf16>
    %cst_21 = arith.constant dense<0.000000e+00> : vector<4x5x8xf32>
    %36 = tpu.matmul %33, %35, %cst_21 {dimension_numbers = #tpu.dot_dimension_numbers<[2], [1], [1], [2], [0, 0, 0, 1, 1, 2], [0], [0]>} : vector<4x5x32xbf16>, vector<4x32x8xbf16>, vector<4x5x8xf32> -> vector<4x5x8xf32>
    %c0_22 = arith.constant 0 : index
    %c0_23 = arith.constant 0 : index
    %c0_24 = arith.constant 0 : index
    %c0_25 = arith.constant 0 : index
    %37 = vector.load %arg7[%c0_22, %c0_23, %c0_24, %c0_25] : memref<2x4x1x8xf32, #tpu.memory_space<vmem>>, vector<1x4x1x8xf32>
    %38 = vector.shape_cast %37 : vector<1x4x1x8xf32> to vector<4x1x8xf32>
    %39 = vector.broadcast %38 : vector<4x1x8xf32> to vector<4x5x8xf32>
    %40 = arith.addf %36, %39 : vector<4x5x8xf32>
    %c0_26 = arith.constant 0 : index
    %c0_27 = arith.constant 0 : index
    %c0_28 = arith.constant 0 : index
    %c0_29 = arith.constant 0 : index
    %41 = vector.load %arg8[%c0_26, %c0_27, %c0_28, %c0_29] : memref<2x4x32x8xbf16, #tpu.memory_space<vmem>>, vector<1x4x32x8xbf16>
    %42 = vector.shape_cast %41 : vector<1x4x32x8xbf16> to vector<4x32x8xbf16>
    %cst_30 = arith.constant dense<0.000000e+00> : vector<4x5x8xf32>
    %43 = tpu.matmul %33, %42, %cst_30 {dimension_numbers = #tpu.dot_dimension_numbers<[2], [1], [1], [2], [0, 0, 0, 1, 1, 2], [0], [0]>} : vector<4x5x32xbf16>, vector<4x32x8xbf16>, vector<4x5x8xf32> -> vector<4x5x8xf32>
    %c0_31 = arith.constant 0 : index
    %c0_32 = arith.constant 0 : index
    %c0_33 = arith.constant 0 : index
    %c0_34 = arith.constant 0 : index
    %44 = vector.load %arg9[%c0_31, %c0_32, %c0_33, %c0_34] : memref<2x4x1x8xf32, #tpu.memory_space<vmem>>, vector<1x4x1x8xf32>
    %45 = vector.shape_cast %44 : vector<1x4x1x8xf32> to vector<4x1x8xf32>
    %46 = vector.broadcast %45 : vector<4x1x8xf32> to vector<4x5x8xf32>
    %47 = arith.addf %43, %46 : vector<4x5x8xf32>
    %c0_35 = arith.constant 0 : index
    %c0_36 = arith.constant 0 : index
    %c0_37 = arith.constant 0 : index
    %c0_38 = arith.constant 0 : index
    %48 = vector.load %arg10[%c0_35, %c0_36, %c0_37, %c0_38] : memref<2x4x32x8xbf16, #tpu.memory_space<vmem>>, vector<1x4x32x8xbf16>
    %49 = vector.shape_cast %48 : vector<1x4x32x8xbf16> to vector<4x32x8xbf16>
    %cst_39 = arith.constant dense<0.000000e+00> : vector<4x5x8xf32>
    %50 = tpu.matmul %33, %49, %cst_39 {dimension_numbers = #tpu.dot_dimension_numbers<[2], [1], [1], [2], [0, 0, 0, 1, 1, 2], [0], [0]>} : vector<4x5x32xbf16>, vector<4x32x8xbf16>, vector<4x5x8xf32> -> vector<4x5x8xf32>
    %c0_40 = arith.constant 0 : index
    %c0_41 = arith.constant 0 : index
    %c0_42 = arith.constant 0 : index
    %c0_43 = arith.constant 0 : index
    %51 = vector.load %arg11[%c0_40, %c0_41, %c0_42, %c0_43] : memref<2x4x1x8xf32, #tpu.memory_space<vmem>>, vector<1x4x1x8xf32>
    %52 = vector.shape_cast %51 : vector<1x4x1x8xf32> to vector<4x1x8xf32>
    %53 = vector.broadcast %52 : vector<4x1x8xf32> to vector<4x5x8xf32>
    %54 = arith.addf %50, %53 : vector<4x5x8xf32>
    %55 = arith.truncf %40 : vector<4x5x8xf32> to vector<4x5x8xbf16>
    %56 = arith.truncf %47 : vector<4x5x8xf32> to vector<4x5x8xbf16>
    %cst_44 = arith.constant dense<0.000000e+00> : vector<4x5x5xf32>
    %57 = tpu.matmul %55, %56, %cst_44 {dimension_numbers = #tpu.dot_dimension_numbers<[2], [2], [1], [1], [0, 0, 0, 1, 1, 1], [0], [0]>} : vector<4x5x8xbf16>, vector<4x5x8xbf16>, vector<4x5x5xf32> -> vector<4x5x5xf32>
    %cst_45 = arith.constant dense<0xFF800000> : vector<4x5xf32>
    %58 = vector.multi_reduction <maximumf>, %57, %cst_45 [2] : vector<4x5x5xf32> to vector<4x5xf32>
    %59 = vector.shape_cast %58 : vector<4x5xf32> to vector<4x5x1xf32>
    %60 = vector.broadcast %59 : vector<4x5x1xf32> to vector<4x5x5xf32>
    %61 = arith.subf %57, %60 : vector<4x5x5xf32>
    %62 = math.exp %61 : vector<4x5x5xf32>
    %cst_46 = arith.constant dense<0.000000e+00> : vector<4x5xf32>
    %63 = vector.multi_reduction <add>, %62, %cst_46 [2] : vector<4x5x5xf32> to vector<4x5xf32>
    %64 = vector.shape_cast %63 : vector<4x5xf32> to vector<4x5x1xf32>
    %65 = tpu.reciprocal %64 {approx = true} : vector<4x5x1xf32> -> vector<4x5x1xf32>
    %66 = vector.broadcast %65 : vector<4x5x1xf32> to vector<4x5x5xf32>
    %67 = arith.mulf %62, %66 : vector<4x5x5xf32>
    %68 = arith.truncf %67 : vector<4x5x5xf32> to vector<4x5x5xbf16>
    %69 = arith.truncf %54 : vector<4x5x8xf32> to vector<4x5x8xbf16>
    %cst_47 = arith.constant dense<0.000000e+00> : vector<4x5x8xf32>
    %70 = tpu.matmul %68, %69, %cst_47 {dimension_numbers = #tpu.dot_dimension_numbers<[2], [1], [1], [2], [0, 0, 0, 1, 1, 2], [0], [0]>} : vector<4x5x5xbf16>, vector<4x5x8xbf16>, vector<4x5x8xf32> -> vector<4x5x8xf32>
    %71 = arith.truncf %70 : vector<4x5x8xf32> to vector<4x5x8xbf16>
    %c0_48 = arith.constant 0 : index
    %c0_49 = arith.constant 0 : index
    %c0_50 = arith.constant 0 : index
    %c0_51 = arith.constant 0 : index
    %72 = vector.load %arg12[%c0_48, %c0_49, %c0_50, %c0_51] : memref<2x4x8x32xbf16, #tpu.memory_space<vmem>>, vector<1x4x8x32xbf16>
    %73 = vector.shape_cast %72 : vector<1x4x8x32xbf16> to vector<4x8x32xbf16>
    %cst_52 = arith.constant dense<0.000000e+00> : vector<4x5x32xf32>
    %74 = tpu.matmul %71, %73, %cst_52 {dimension_numbers = #tpu.dot_dimension_numbers<[2], [1], [1], [2], [0, 0, 0, 1, 1, 2], [0], [0]>} : vector<4x5x8xbf16>, vector<4x8x32xbf16>, vector<4x5x32xf32> -> vector<4x5x32xf32>
    %cst_53 = arith.constant dense<0.000000e+00> : vector<5x32xf32>
    %75 = vector.multi_reduction <add>, %74, %cst_53 [0] : vector<4x5x32xf32> to vector<5x32xf32>
    %76 = arith.addf %5, %75 : vector<5x32xf32>
    %c0_54 = arith.constant 0 : index
    %c0_55 = arith.constant 0 : index
    %c0_56 = arith.constant 0 : index
    %77 = vector.load %arg13[%c0_54, %c0_55, %c0_56] : memref<2x1x32xf32, #tpu.memory_space<vmem>>, vector<1x1x32xf32>
    %78 = vector.shape_cast %77 : vector<1x1x32xf32> to vector<1x32xf32>
    %79 = vector.broadcast %78 : vector<1x32xf32> to vector<5x32xf32>
    %80 = arith.addf %76, %79 : vector<5x32xf32>
    %c0_57 = arith.constant 0 : index
    %c0_58 = arith.constant 0 : index
    %c0_59 = arith.constant 0 : index
    %81 = vector.load %arg14[%c0_57, %c0_58, %c0_59] : memref<2x1x32xf32, #tpu.memory_space<vmem>>, vector<1x1x32xf32>
    %82 = vector.shape_cast %81 : vector<1x1x32xf32> to vector<1x32xf32>
    %c0_60 = arith.constant 0 : index
    %c0_61 = arith.constant 0 : index
    %c0_62 = arith.constant 0 : index
    %83 = vector.load %arg15[%c0_60, %c0_61, %c0_62] : memref<2x1x32xf32, #tpu.memory_space<vmem>>, vector<1x1x32xf32>
    %84 = vector.shape_cast %83 : vector<1x1x32xf32> to vector<1x32xf32>
    %cst_63 = arith.constant dense<0.000000e+00> : vector<5xf32>
    %85 = vector.multi_reduction <add>, %80, %cst_63 [1] : vector<5x32xf32> to vector<5xf32>
    %86 = vector.shape_cast %85 : vector<5xf32> to vector<5x1xf32>
    %cst_64 = arith.constant 3.200000e+01 : f32
    %87 = vector.broadcast %cst_64 : f32 to vector<5x1xf32>
    %88 = arith.divf %86, %87 : vector<5x1xf32>
    %89 = vector.broadcast %88 : vector<5x1xf32> to vector<5x32xf32>
    %90 = arith.subf %80, %89 : vector<5x32xf32>
    %91 = arith.mulf %90, %90 : vector<5x32xf32>
    %cst_65 = arith.constant dense<0.000000e+00> : vector<5xf32>
    %92 = vector.multi_reduction <add>, %91, %cst_65 [1] : vector<5x32xf32> to vector<5xf32>
    %93 = vector.shape_cast %92 : vector<5xf32> to vector<5x1xf32>
    %cst_66 = arith.constant 3.200000e+01 : f32
    %94 = vector.broadcast %cst_66 : f32 to vector<5x1xf32>
    %95 = arith.divf %93, %94 : vector<5x1xf32>
    %cst_67 = arith.constant 9.99999996E-13 : f32
    %96 = vector.broadcast %cst_67 : f32 to vector<5x1xf32>
    %97 = arith.addf %95, %96 : vector<5x1xf32>
    %98 = math.rsqrt %97 : vector<5x1xf32>
    %99 = vector.broadcast %98 : vector<5x1xf32> to vector<5x32xf32>
    %100 = arith.mulf %90, %99 : vector<5x32xf32>
    %101 = vector.broadcast %82 : vector<1x32xf32> to vector<5x32xf32>
    %102 = arith.mulf %100, %101 : vector<5x32xf32>
    %103 = vector.broadcast %84 : vector<1x32xf32> to vector<5x32xf32>
    %104 = arith.addf %102, %103 : vector<5x32xf32>
    %105 = arith.truncf %104 : vector<5x32xf32> to vector<5x32xbf16>
    %c0_68 = arith.constant 0 : index
    %c0_69 = arith.constant 0 : index
    %c0_70 = arith.constant 0 : index
    %106 = vector.load %arg16[%c0_68, %c0_69, %c0_70] : memref<2x32x64xbf16, #tpu.memory_space<vmem>>, vector<1x32x64xbf16>
    %107 = vector.shape_cast %106 : vector<1x32x64xbf16> to vector<32x64xbf16>
    %cst_71 = arith.constant dense<0.000000e+00> : vector<5x64xf32>
    %108 = tpu.matmul %105, %107, %cst_71 {dimension_numbers = #tpu.dot_dimension_numbers<[1], [0], [0], [1], [0, 0, 1, 1], [], []>} : vector<5x32xbf16>, vector<32x64xbf16>, vector<5x64xf32> -> vector<5x64xf32>
    %c0_72 = arith.constant 0 : index
    %c0_73 = arith.constant 0 : index
    %c0_74 = arith.constant 0 : index
    %109 = vector.load %arg17[%c0_72, %c0_73, %c0_74] : memref<2x1x64xf32, #tpu.memory_space<vmem>>, vector<1x1x64xf32>
    %110 = vector.shape_cast %109 : vector<1x1x64xf32> to vector<1x64xf32>
    %111 = vector.broadcast %110 : vector<1x64xf32> to vector<5x64xf32>
    %112 = arith.addf %108, %111 : vector<5x64xf32>
    %cst_75 = arith.constant 5.000000e-01 : f32
    %113 = vector.broadcast %cst_75 : f32 to vector<5x64xf32>
    %114 = arith.mulf %113, %112 : vector<5x64xf32>
    %cst_76 = arith.constant 0.707106769 : f32
    %115 = vector.broadcast %cst_76 : f32 to vector<5x64xf32>
    %116 = arith.mulf %112, %115 : vector<5x64xf32>
    %117 = math.absf %116 : vector<5x64xf32>
    %cst_77 = arith.constant 0.327591091 : f32
    %118 = vector.broadcast %cst_77 : f32 to vector<5x64xf32>
    %119 = arith.mulf %118, %117 : vector<5x64xf32>
    %cst_78 = arith.constant 1.000000e+00 : f32
    %120 = vector.broadcast %cst_78 : f32 to vector<5x64xf32>
    %121 = arith.addf %120, %119 : vector<5x64xf32>
    %122 = tpu.reciprocal %121 : vector<5x64xf32> -> vector<5x64xf32>
    %cst_79 = arith.constant 1.06140542 : f32
    %123 = vector.broadcast %cst_79 : f32 to vector<5x64xf32>
    %124 = arith.mulf %123, %122 : vector<5x64xf32>
    %cst_80 = arith.constant -1.45315206 : f32
    %125 = vector.broadcast %cst_80 : f32 to vector<5x64xf32>
    %126 = arith.addf %124, %125 : vector<5x64xf32>
    %127 = arith.mulf %126, %122 : vector<5x64xf32>
    %cst_81 = arith.constant 1.42141378 : f32
    %128 = vector.broadcast %cst_81 : f32 to vector<5x64xf32>
    %129 = arith.addf %127, %128 : vector<5x64xf32>
    %130 = arith.mulf %129, %122 : vector<5x64xf32>
    %cst_82 = arith.constant -0.284496725 : f32
    %131 = vector.broadcast %cst_82 : f32 to vector<5x64xf32>
    %132 = arith.addf %130, %131 : vector<5x64xf32>
    %133 = arith.mulf %132, %122 : vector<5x64xf32>
    %cst_83 = arith.constant 0.254829586 : f32
    %134 = vector.broadcast %cst_83 : f32 to vector<5x64xf32>
    %135 = arith.addf %133, %134 : vector<5x64xf32>
    %136 = arith.mulf %135, %122 : vector<5x64xf32>
    %cst_84 = arith.constant 0.000000e+00 : f32
    %137 = vector.broadcast %cst_84 : f32 to vector<5x64xf32>
    %138 = arith.subf %137, %117 : vector<5x64xf32>
    %139 = arith.mulf %138, %117 : vector<5x64xf32>
    %140 = math.exp %139 : vector<5x64xf32>
    %141 = arith.mulf %136, %140 : vector<5x64xf32>
    %cst_85 = arith.constant 1.000000e+00 : f32
    %142 = vector.broadcast %cst_85 : f32 to vector<5x64xf32>
    %143 = arith.subf %142, %141 : vector<5x64xf32>
    %cst_86 = arith.constant 0.000000e+00 : f32
    %144 = vector.broadcast %cst_86 : f32 to vector<5x64xf32>
    %145 = arith.cmpf oge, %116, %144 : vector<5x64xf32>
    %cst_87 = arith.constant 0.000000e+00 : f32
    %146 = vector.broadcast %cst_87 : f32 to vector<5x64xf32>
    %147 = arith.subf %146, %143 : vector<5x64xf32>
    %148 = arith.select %145, %143, %147 : vector<5x64xi1>, vector<5x64xf32>
    %cst_88 = arith.constant 1.000000e+00 : f32
    %149 = vector.broadcast %cst_88 : f32 to vector<5x64xf32>
    %150 = arith.addf %149, %148 : vector<5x64xf32>
    %151 = arith.mulf %114, %150 : vector<5x64xf32>
    %152 = arith.truncf %151 : vector<5x64xf32> to vector<5x64xbf16>
    %c0_89 = arith.constant 0 : index
    %c0_90 = arith.constant 0 : index
    %c0_91 = arith.constant 0 : index
    %153 = vector.load %arg18[%c0_89, %c0_90, %c0_91] : memref<2x64x32xbf16, #tpu.memory_space<vmem>>, vector<1x64x32xbf16>
    %154 = vector.shape_cast %153 : vector<1x64x32xbf16> to vector<64x32xbf16>
    %cst_92 = arith.constant dense<0.000000e+00> : vector<5x32xf32>
    %155 = tpu.matmul %152, %154, %cst_92 {dimension_numbers = #tpu.dot_dimension_numbers<[1], [0], [0], [1], [0, 0, 1, 1], [], []>} : vector<5x64xbf16>, vector<64x32xbf16>, vector<5x32xf32> -> vector<5x32xf32>
    %c0_93 = arith.constant 0 : index
    %c0_94 = arith.constant 0 : index
    %c0_95 = arith.constant 0 : index
    %156 = vector.load %arg19[%c0_93, %c0_94, %c0_95] : memref<2x1x32xf32, #tpu.memory_space<vmem>>, vector<1x1x32xf32>
    %157 = vector.shape_cast %156 : vector<1x1x32xf32> to vector<1x32xf32>
    %158 = vector.broadcast %157 : vector<1x32xf32> to vector<5x32xf32>
    %159 = arith.addf %155, %158 : vector<5x32xf32>
    %160 = arith.addf %80, %159 : vector<5x32xf32>
    %c1 = arith.constant 1 : index
    %c0_96 = arith.constant 0 : index
    %c0_97 = arith.constant 0 : index
    %161 = vector.load %arg4[%c1, %c0_96, %c0_97] : memref<2x1x32xf32, #tpu.memory_space<vmem>>, vector<1x1x32xf32>
    %162 = vector.shape_cast %161 : vector<1x1x32xf32> to vector<1x32xf32>
    %c1_98 = arith.constant 1 : index
    %c0_99 = arith.constant 0 : index
    %c0_100 = arith.constant 0 : index
    %163 = vector.load %arg5[%c1_98, %c0_99, %c0_100] : memref<2x1x32xf32, #tpu.memory_space<vmem>>, vector<1x1x32xf32>
    %164 = vector.shape_cast %163 : vector<1x1x32xf32> to vector<1x32xf32>
    %cst_101 = arith.constant dense<0.000000e+00> : vector<5xf32>
    %165 = vector.multi_reduction <add>, %160, %cst_101 [1] : vector<5x32xf32> to vector<5xf32>
    %166 = vector.shape_cast %165 : vector<5xf32> to vector<5x1xf32>
    %cst_102 = arith.constant 3.200000e+01 : f32
    %167 = vector.broadcast %cst_102 : f32 to vector<5x1xf32>
    %168 = arith.divf %166, %167 : vector<5x1xf32>
    %169 = vector.broadcast %168 : vector<5x1xf32> to vector<5x32xf32>
    %170 = arith.subf %160, %169 : vector<5x32xf32>
    %171 = arith.mulf %170, %170 : vector<5x32xf32>
    %cst_103 = arith.constant dense<0.000000e+00> : vector<5xf32>
    %172 = vector.multi_reduction <add>, %171, %cst_103 [1] : vector<5x32xf32> to vector<5xf32>
    %173 = vector.shape_cast %172 : vector<5xf32> to vector<5x1xf32>
    %cst_104 = arith.constant 3.200000e+01 : f32
    %174 = vector.broadcast %cst_104 : f32 to vector<5x1xf32>
    %175 = arith.divf %173, %174 : vector<5x1xf32>
    %cst_105 = arith.constant 9.99999996E-13 : f32
    %176 = vector.broadcast %cst_105 : f32 to vector<5x1xf32>
    %177 = arith.addf %175, %176 : vector<5x1xf32>
    %178 = math.rsqrt %177 : vector<5x1xf32>
    %179 = vector.broadcast %178 : vector<5x1xf32> to vector<5x32xf32>
    %180 = arith.mulf %170, %179 : vector<5x32xf32>
    %181 = vector.broadcast %162 : vector<1x32xf32> to vector<5x32xf32>
    %182 = arith.mulf %180, %181 : vector<5x32xf32>
    %183 = vector.broadcast %164 : vector<1x32xf32> to vector<5x32xf32>
    %184 = arith.addf %182, %183 : vector<5x32xf32>
    %185 = arith.truncf %184 : vector<5x32xf32> to vector<5x32xbf16>
    %186 = vector.shape_cast %185 : vector<5x32xbf16> to vector<1x5x32xbf16>
    %187 = vector.shape_cast %186 : vector<1x5x32xbf16> to vector<1x5x32xbf16>
    %188 = vector.broadcast %187 : vector<1x5x32xbf16> to vector<4x5x32xbf16>
    %c1_106 = arith.constant 1 : index
    %c0_107 = arith.constant 0 : index
    %c0_108 = arith.constant 0 : index
    %c0_109 = arith.constant 0 : index
    %189 = vector.load %arg6[%c1_106, %c0_107, %c0_108, %c0_109] : memref<2x4x32x8xbf16, #tpu.memory_space<vmem>>, vector<1x4x32x8xbf16>
    %190 = vector.shape_cast %189 : vector<1x4x32x8xbf16> to vector<4x32x8xbf16>
    %cst_110 = arith.constant dense<0.000000e+00> : vector<4x5x8xf32>
    %191 = tpu.matmul %188, %190, %cst_110 {dimension_numbers = #tpu.dot_dimension_numbers<[2], [1], [1], [2], [0, 0, 0, 1, 1, 2], [0], [0]>} : vector<4x5x32xbf16>, vector<4x32x8xbf16>, vector<4x5x8xf32> -> vector<4x5x8xf32>
    %c1_111 = arith.constant 1 : index
    %c0_112 = arith.constant 0 : index
    %c0_113 = arith.constant 0 : index
    %c0_114 = arith.constant 0 : index
    %192 = vector.load %arg7[%c1_111, %c0_112, %c0_113, %c0_114] : memref<2x4x1x8xf32, #tpu.memory_space<vmem>>, vector<1x4x1x8xf32>
    %193 = vector.shape_cast %192 : vector<1x4x1x8xf32> to vector<4x1x8xf32>
    %194 = vector.broadcast %193 : vector<4x1x8xf32> to vector<4x5x8xf32>
    %195 = arith.addf %191, %194 : vector<4x5x8xf32>
    %c1_115 = arith.constant 1 : index
    %c0_116 = arith.constant 0 : index
    %c0_117 = arith.constant 0 : index
    %c0_118 = arith.constant 0 : index
    %196 = vector.load %arg8[%c1_115, %c0_116, %c0_117, %c0_118] : memref<2x4x32x8xbf16, #tpu.memory_space<vmem>>, vector<1x4x32x8xbf16>
    %197 = vector.shape_cast %196 : vector<1x4x32x8xbf16> to vector<4x32x8xbf16>
    %cst_119 = arith.constant dense<0.000000e+00> : vector<4x5x8xf32>
    %198 = tpu.matmul %188, %197, %cst_119 {dimension_numbers = #tpu.dot_dimension_numbers<[2], [1], [1], [2], [0, 0, 0, 1, 1, 2], [0], [0]>} : vector<4x5x32xbf16>, vector<4x32x8xbf16>, vector<4x5x8xf32> -> vector<4x5x8xf32>
    %c1_120 = arith.constant 1 : index
    %c0_121 = arith.constant 0 : index
    %c0_122 = arith.constant 0 : index
    %c0_123 = arith.constant 0 : index
    %199 = vector.load %arg9[%c1_120, %c0_121, %c0_122, %c0_123] : memref<2x4x1x8xf32, #tpu.memory_space<vmem>>, vector<1x4x1x8xf32>
    %200 = vector.shape_cast %199 : vector<1x4x1x8xf32> to vector<4x1x8xf32>
    %201 = vector.broadcast %200 : vector<4x1x8xf32> to vector<4x5x8xf32>
    %202 = arith.addf %198, %201 : vector<4x5x8xf32>
    %c1_124 = arith.constant 1 : index
    %c0_125 = arith.constant 0 : index
    %c0_126 = arith.constant 0 : index
    %c0_127 = arith.constant 0 : index
    %203 = vector.load %arg10[%c1_124, %c0_125, %c0_126, %c0_127] : memref<2x4x32x8xbf16, #tpu.memory_space<vmem>>, vector<1x4x32x8xbf16>
    %204 = vector.shape_cast %203 : vector<1x4x32x8xbf16> to vector<4x32x8xbf16>
    %cst_128 = arith.constant dense<0.000000e+00> : vector<4x5x8xf32>
    %205 = tpu.matmul %188, %204, %cst_128 {dimension_numbers = #tpu.dot_dimension_numbers<[2], [1], [1], [2], [0, 0, 0, 1, 1, 2], [0], [0]>} : vector<4x5x32xbf16>, vector<4x32x8xbf16>, vector<4x5x8xf32> -> vector<4x5x8xf32>
    %c1_129 = arith.constant 1 : index
    %c0_130 = arith.constant 0 : index
    %c0_131 = arith.constant 0 : index
    %c0_132 = arith.constant 0 : index
    %206 = vector.load %arg11[%c1_129, %c0_130, %c0_131, %c0_132] : memref<2x4x1x8xf32, #tpu.memory_space<vmem>>, vector<1x4x1x8xf32>
    %207 = vector.shape_cast %206 : vector<1x4x1x8xf32> to vector<4x1x8xf32>
    %208 = vector.broadcast %207 : vector<4x1x8xf32> to vector<4x5x8xf32>
    %209 = arith.addf %205, %208 : vector<4x5x8xf32>
    %210 = arith.truncf %195 : vector<4x5x8xf32> to vector<4x5x8xbf16>
    %211 = arith.truncf %202 : vector<4x5x8xf32> to vector<4x5x8xbf16>
    %cst_133 = arith.constant dense<0.000000e+00> : vector<4x5x5xf32>
    %212 = tpu.matmul %210, %211, %cst_133 {dimension_numbers = #tpu.dot_dimension_numbers<[2], [2], [1], [1], [0, 0, 0, 1, 1, 1], [0], [0]>} : vector<4x5x8xbf16>, vector<4x5x8xbf16>, vector<4x5x5xf32> -> vector<4x5x5xf32>
    %cst_134 = arith.constant dense<0xFF800000> : vector<4x5xf32>
    %213 = vector.multi_reduction <maximumf>, %212, %cst_134 [2] : vector<4x5x5xf32> to vector<4x5xf32>
    %214 = vector.shape_cast %213 : vector<4x5xf32> to vector<4x5x1xf32>
    %215 = vector.broadcast %214 : vector<4x5x1xf32> to vector<4x5x5xf32>
    %216 = arith.subf %212, %215 : vector<4x5x5xf32>
    %217 = math.exp %216 : vector<4x5x5xf32>
    %cst_135 = arith.constant dense<0.000000e+00> : vector<4x5xf32>
    %218 = vector.multi_reduction <add>, %217, %cst_135 [2] : vector<4x5x5xf32> to vector<4x5xf32>
    %219 = vector.shape_cast %218 : vector<4x5xf32> to vector<4x5x1xf32>
    %220 = tpu.reciprocal %219 {approx = true} : vector<4x5x1xf32> -> vector<4x5x1xf32>
    %221 = vector.broadcast %220 : vector<4x5x1xf32> to vector<4x5x5xf32>
    %222 = arith.mulf %217, %221 : vector<4x5x5xf32>
    %223 = arith.truncf %222 : vector<4x5x5xf32> to vector<4x5x5xbf16>
    %224 = arith.truncf %209 : vector<4x5x8xf32> to vector<4x5x8xbf16>
    %cst_136 = arith.constant dense<0.000000e+00> : vector<4x5x8xf32>
    %225 = tpu.matmul %223, %224, %cst_136 {dimension_numbers = #tpu.dot_dimension_numbers<[2], [1], [1], [2], [0, 0, 0, 1, 1, 2], [0], [0]>} : vector<4x5x5xbf16>, vector<4x5x8xbf16>, vector<4x5x8xf32> -> vector<4x5x8xf32>
    %226 = arith.truncf %225 : vector<4x5x8xf32> to vector<4x5x8xbf16>
    %c1_137 = arith.constant 1 : index
    %c0_138 = arith.constant 0 : index
    %c0_139 = arith.constant 0 : index
    %c0_140 = arith.constant 0 : index
    %227 = vector.load %arg12[%c1_137, %c0_138, %c0_139, %c0_140] : memref<2x4x8x32xbf16, #tpu.memory_space<vmem>>, vector<1x4x8x32xbf16>
    %228 = vector.shape_cast %227 : vector<1x4x8x32xbf16> to vector<4x8x32xbf16>
    %cst_141 = arith.constant dense<0.000000e+00> : vector<4x5x32xf32>
    %229 = tpu.matmul %226, %228, %cst_141 {dimension_numbers = #tpu.dot_dimension_numbers<[2], [1], [1], [2], [0, 0, 0, 1, 1, 2], [0], [0]>} : vector<4x5x8xbf16>, vector<4x8x32xbf16>, vector<4x5x32xf32> -> vector<4x5x32xf32>
    %cst_142 = arith.constant dense<0.000000e+00> : vector<5x32xf32>
    %230 = vector.multi_reduction <add>, %229, %cst_142 [0] : vector<4x5x32xf32> to vector<5x32xf32>
    %231 = arith.addf %160, %230 : vector<5x32xf32>
    %c1_143 = arith.constant 1 : index
    %c0_144 = arith.constant 0 : index
    %c0_145 = arith.constant 0 : index
    %232 = vector.load %arg13[%c1_143, %c0_144, %c0_145] : memref<2x1x32xf32, #tpu.memory_space<vmem>>, vector<1x1x32xf32>
    %233 = vector.shape_cast %232 : vector<1x1x32xf32> to vector<1x32xf32>
    %234 = vector.broadcast %233 : vector<1x32xf32> to vector<5x32xf32>
    %235 = arith.addf %231, %234 : vector<5x32xf32>
    %c1_146 = arith.constant 1 : index
    %c0_147 = arith.constant 0 : index
    %c0_148 = arith.constant 0 : index
    %236 = vector.load %arg14[%c1_146, %c0_147, %c0_148] : memref<2x1x32xf32, #tpu.memory_space<vmem>>, vector<1x1x32xf32>
    %237 = vector.shape_cast %236 : vector<1x1x32xf32> to vector<1x32xf32>
    %c1_149 = arith.constant 1 : index
    %c0_150 = arith.constant 0 : index
    %c0_151 = arith.constant 0 : index
    %238 = vector.load %arg15[%c1_149, %c0_150, %c0_151] : memref<2x1x32xf32, #tpu.memory_space<vmem>>, vector<1x1x32xf32>
    %239 = vector.shape_cast %238 : vector<1x1x32xf32> to vector<1x32xf32>
    %cst_152 = arith.constant dense<0.000000e+00> : vector<5xf32>
    %240 = vector.multi_reduction <add>, %235, %cst_152 [1] : vector<5x32xf32> to vector<5xf32>
    %241 = vector.shape_cast %240 : vector<5xf32> to vector<5x1xf32>
    %cst_153 = arith.constant 3.200000e+01 : f32
    %242 = vector.broadcast %cst_153 : f32 to vector<5x1xf32>
    %243 = arith.divf %241, %242 : vector<5x1xf32>
    %244 = vector.broadcast %243 : vector<5x1xf32> to vector<5x32xf32>
    %245 = arith.subf %235, %244 : vector<5x32xf32>
    %246 = arith.mulf %245, %245 : vector<5x32xf32>
    %cst_154 = arith.constant dense<0.000000e+00> : vector<5xf32>
    %247 = vector.multi_reduction <add>, %246, %cst_154 [1] : vector<5x32xf32> to vector<5xf32>
    %248 = vector.shape_cast %247 : vector<5xf32> to vector<5x1xf32>
    %cst_155 = arith.constant 3.200000e+01 : f32
    %249 = vector.broadcast %cst_155 : f32 to vector<5x1xf32>
    %250 = arith.divf %248, %249 : vector<5x1xf32>
    %cst_156 = arith.constant 9.99999996E-13 : f32
    %251 = vector.broadcast %cst_156 : f32 to vector<5x1xf32>
    %252 = arith.addf %250, %251 : vector<5x1xf32>
    %253 = math.rsqrt %252 : vector<5x1xf32>
    %254 = vector.broadcast %253 : vector<5x1xf32> to vector<5x32xf32>
    %255 = arith.mulf %245, %254 : vector<5x32xf32>
    %256 = vector.broadcast %237 : vector<1x32xf32> to vector<5x32xf32>
    %257 = arith.mulf %255, %256 : vector<5x32xf32>
    %258 = vector.broadcast %239 : vector<1x32xf32> to vector<5x32xf32>
    %259 = arith.addf %257, %258 : vector<5x32xf32>
    %260 = arith.truncf %259 : vector<5x32xf32> to vector<5x32xbf16>
    %c1_157 = arith.constant 1 : index
    %c0_158 = arith.constant 0 : index
    %c0_159 = arith.constant 0 : index
    %261 = vector.load %arg16[%c1_157, %c0_158, %c0_159] : memref<2x32x64xbf16, #tpu.memory_space<vmem>>, vector<1x32x64xbf16>
    %262 = vector.shape_cast %261 : vector<1x32x64xbf16> to vector<32x64xbf16>
    %cst_160 = arith.constant dense<0.000000e+00> : vector<5x64xf32>
    %263 = tpu.matmul %260, %262, %cst_160 {dimension_numbers = #tpu.dot_dimension_numbers<[1], [0], [0], [1], [0, 0, 1, 1], [], []>} : vector<5x32xbf16>, vector<32x64xbf16>, vector<5x64xf32> -> vector<5x64xf32>
    %c1_161 = arith.constant 1 : index
    %c0_162 = arith.constant 0 : index
    %c0_163 = arith.constant 0 : index
    %264 = vector.load %arg17[%c1_161, %c0_162, %c0_163] : memref<2x1x64xf32, #tpu.memory_space<vmem>>, vector<1x1x64xf32>
    %265 = vector.shape_cast %264 : vector<1x1x64xf32> to vector<1x64xf32>
    %266 = vector.broadcast %265 : vector<1x64xf32> to vector<5x64xf32>
    %267 = arith.addf %263, %266 : vector<5x64xf32>
    %cst_164 = arith.constant 5.000000e-01 : f32
    %268 = vector.broadcast %cst_164 : f32 to vector<5x64xf32>
    %269 = arith.mulf %268, %267 : vector<5x64xf32>
    %cst_165 = arith.constant 0.707106769 : f32
    %270 = vector.broadcast %cst_165 : f32 to vector<5x64xf32>
    %271 = arith.mulf %267, %270 : vector<5x64xf32>
    %272 = math.absf %271 : vector<5x64xf32>
    %cst_166 = arith.constant 0.327591091 : f32
    %273 = vector.broadcast %cst_166 : f32 to vector<5x64xf32>
    %274 = arith.mulf %273, %272 : vector<5x64xf32>
    %cst_167 = arith.constant 1.000000e+00 : f32
    %275 = vector.broadcast %cst_167 : f32 to vector<5x64xf32>
    %276 = arith.addf %275, %274 : vector<5x64xf32>
    %277 = tpu.reciprocal %276 : vector<5x64xf32> -> vector<5x64xf32>
    %cst_168 = arith.constant 1.06140542 : f32
    %278 = vector.broadcast %cst_168 : f32 to vector<5x64xf32>
    %279 = arith.mulf %278, %277 : vector<5x64xf32>
    %cst_169 = arith.constant -1.45315206 : f32
    %280 = vector.broadcast %cst_169 : f32 to vector<5x64xf32>
    %281 = arith.addf %279, %280 : vector<5x64xf32>
    %282 = arith.mulf %281, %277 : vector<5x64xf32>
    %cst_170 = arith.constant 1.42141378 : f32
    %283 = vector.broadcast %cst_170 : f32 to vector<5x64xf32>
    %284 = arith.addf %282, %283 : vector<5x64xf32>
    %285 = arith.mulf %284, %277 : vector<5x64xf32>
    %cst_171 = arith.constant -0.284496725 : f32
    %286 = vector.broadcast %cst_171 : f32 to vector<5x64xf32>
    %287 = arith.addf %285, %286 : vector<5x64xf32>
    %288 = arith.mulf %287, %277 : vector<5x64xf32>
    %cst_172 = arith.constant 0.254829586 : f32
    %289 = vector.broadcast %cst_172 : f32 to vector<5x64xf32>
    %290 = arith.addf %288, %289 : vector<5x64xf32>
    %291 = arith.mulf %290, %277 : vector<5x64xf32>
    %cst_173 = arith.constant 0.000000e+00 : f32
    %292 = vector.broadcast %cst_173 : f32 to vector<5x64xf32>
    %293 = arith.subf %292, %272 : vector<5x64xf32>
    %294 = arith.mulf %293, %272 : vector<5x64xf32>
    %295 = math.exp %294 : vector<5x64xf32>
    %296 = arith.mulf %291, %295 : vector<5x64xf32>
    %cst_174 = arith.constant 1.000000e+00 : f32
    %297 = vector.broadcast %cst_174 : f32 to vector<5x64xf32>
    %298 = arith.subf %297, %296 : vector<5x64xf32>
    %cst_175 = arith.constant 0.000000e+00 : f32
    %299 = vector.broadcast %cst_175 : f32 to vector<5x64xf32>
    %300 = arith.cmpf oge, %271, %299 : vector<5x64xf32>
    %cst_176 = arith.constant 0.000000e+00 : f32
    %301 = vector.broadcast %cst_176 : f32 to vector<5x64xf32>
    %302 = arith.subf %301, %298 : vector<5x64xf32>
    %303 = arith.select %300, %298, %302 : vector<5x64xi1>, vector<5x64xf32>
    %cst_177 = arith.constant 1.000000e+00 : f32
    %304 = vector.broadcast %cst_177 : f32 to vector<5x64xf32>
    %305 = arith.addf %304, %303 : vector<5x64xf32>
    %306 = arith.mulf %269, %305 : vector<5x64xf32>
    %307 = arith.truncf %306 : vector<5x64xf32> to vector<5x64xbf16>
    %c1_178 = arith.constant 1 : index
    %c0_179 = arith.constant 0 : index
    %c0_180 = arith.constant 0 : index
    %308 = vector.load %arg18[%c1_178, %c0_179, %c0_180] : memref<2x64x32xbf16, #tpu.memory_space<vmem>>, vector<1x64x32xbf16>
    %309 = vector.shape_cast %308 : vector<1x64x32xbf16> to vector<64x32xbf16>
    %cst_181 = arith.constant dense<0.000000e+00> : vector<5x32xf32>
    %310 = tpu.matmul %307, %309, %cst_181 {dimension_numbers = #tpu.dot_dimension_numbers<[1], [0], [0], [1], [0, 0, 1, 1], [], []>} : vector<5x64xbf16>, vector<64x32xbf16>, vector<5x32xf32> -> vector<5x32xf32>
    %c1_182 = arith.constant 1 : index
    %c0_183 = arith.constant 0 : index
    %c0_184 = arith.constant 0 : index
    %311 = vector.load %arg19[%c1_182, %c0_183, %c0_184] : memref<2x1x32xf32, #tpu.memory_space<vmem>>, vector<1x1x32xf32>
    %312 = vector.shape_cast %311 : vector<1x1x32xf32> to vector<1x32xf32>
    %313 = vector.broadcast %312 : vector<1x32xf32> to vector<5x32xf32>
    %314 = arith.addf %310, %313 : vector<5x32xf32>
    %315 = arith.addf %235, %314 : vector<5x32xf32>
    %316 = vector.extract_strided_slice %315 {offsets = [0, 0], sizes = [1, 32], strides = [1, 1]} : vector<5x32xf32> to vector<1x32xf32>
    %c0_185 = arith.constant 0 : index
    %c0_186 = arith.constant 0 : index
    %317 = vector.load %arg20[%c0_185, %c0_186] : memref<1x32xf32, #tpu.memory_space<vmem>>, vector<1x32xf32>
    %c0_187 = arith.constant 0 : index
    %c0_188 = arith.constant 0 : index
    %318 = vector.load %arg21[%c0_187, %c0_188] : memref<1x32xf32, #tpu.memory_space<vmem>>, vector<1x32xf32>
    %cst_189 = arith.constant dense<0.000000e+00> : vector<1xf32>
    %319 = vector.multi_reduction <add>, %316, %cst_189 [1] : vector<1x32xf32> to vector<1xf32>
    %320 = vector.shape_cast %319 : vector<1xf32> to vector<1x1xf32>
    %cst_190 = arith.constant 3.200000e+01 : f32
    %321 = vector.broadcast %cst_190 : f32 to vector<1x1xf32>
    %322 = arith.divf %320, %321 : vector<1x1xf32>
    %323 = vector.broadcast %322 : vector<1x1xf32> to vector<1x32xf32>
    %324 = arith.subf %316, %323 : vector<1x32xf32>
    %325 = arith.mulf %324, %324 : vector<1x32xf32>
    %cst_191 = arith.constant dense<0.000000e+00> : vector<1xf32>
    %326 = vector.multi_reduction <add>, %325, %cst_191 [1] : vector<1x32xf32> to vector<1xf32>
    %327 = vector.shape_cast %326 : vector<1xf32> to vector<1x1xf32>
    %cst_192 = arith.constant 3.200000e+01 : f32
    %328 = vector.broadcast %cst_192 : f32 to vector<1x1xf32>
    %329 = arith.divf %327, %328 : vector<1x1xf32>
    %cst_193 = arith.constant 9.99999996E-13 : f32
    %330 = vector.broadcast %cst_193 : f32 to vector<1x1xf32>
    %331 = arith.addf %329, %330 : vector<1x1xf32>
    %332 = math.rsqrt %331 : vector<1x1xf32>
    %333 = vector.broadcast %332 : vector<1x1xf32> to vector<1x32xf32>
    %334 = arith.mulf %324, %333 : vector<1x32xf32>
    %335 = arith.mulf %334, %317 : vector<1x32xf32>
    %336 = arith.addf %335, %318 : vector<1x32xf32>
    %337 = arith.truncf %336 : vector<1x32xf32> to vector<1x32xbf16>
    %c0_194 = arith.constant 0 : index
    %c0_195 = arith.constant 0 : index
    %338 = vector.load %arg22[%c0_194, %c0_195] : memref<32x32xbf16, #tpu.memory_space<vmem>>, vector<32x32xbf16>
    %cst_196 = arith.constant dense<0.000000e+00> : vector<1x32xf32>
    %339 = tpu.matmul %337, %338, %cst_196 {dimension_numbers = #tpu.dot_dimension_numbers<[1], [0], [0], [1], [0, 0, 1, 1], [], []>} : vector<1x32xbf16>, vector<32x32xbf16>, vector<1x32xf32> -> vector<1x32xf32>
    %c0_197 = arith.constant 0 : index
    %c0_198 = arith.constant 0 : index
    %340 = vector.load %arg23[%c0_197, %c0_198] : memref<1x32xf32, #tpu.memory_space<vmem>>, vector<1x32xf32>
    %341 = arith.addf %339, %340 : vector<1x32xf32>
    %342 = math.tanh %341 : vector<1x32xf32>
    %c0_199 = arith.constant 0 : index
    %c0_200 = arith.constant 0 : index
    %c0_201 = arith.constant 0 : index
    %343 = vector.load %arg24[%c0_199, %c0_200, %c0_201] : memref<1x1x32xf32, #tpu.memory_space<vmem>>, vector<1x1x32xf32>
    %344 = vector.shape_cast %343 : vector<1x1x32xf32> to vector<1x32xf32>
    %345 = vector.shape_cast %342 : vector<1x32xf32> to vector<1x1x32xf32>
    tpu.vector_store %arg24[%c0_199, %c0_200, %c0_201], %345 {strides = array<i32>} : memref<1x1x32xf32, #tpu.memory_space<vmem>>, vector<1x1x32xf32>,
    return
  }
  func.func @transform_0(%arg0: i32) -> (i32, i32, i32) {
    %c0_i32 = arith.constant 0 : i32
    %c0_i32_0 = arith.constant 0 : i32
    %c0_i32_1 = arith.constant 0 : i32
    return %arg0, %c0_i32, %c0_i32_0 : i32, i32, i32
  }
  func.func @transform_1(%arg0: i32) -> (i32, i32) {
    %c0_i32 = arith.constant 0 : i32
    %c0_i32_0 = arith.constant 0 : i32
    %c0_i32_1 = arith.constant 0 : i32
    return %c0_i32, %c0_i32_0 : i32, i32
  }
  func.func @transform_2(%arg0: i32) -> (i32, i32) {
    %c0_i32 = arith.constant 0 : i32
    %c0_i32_0 = arith.constant 0 : i32
    %c0_i32_1 = arith.constant 0 : i32
    return %c0_i32, %c0_i32_0 : i32, i32
  }
  func.func @transform_3(%arg0: i32) -> (i32, i32, i32) {
    %c0_i32 = arith.constant 0 : i32
    %c0_i32_0 = arith.constant 0 : i32
    %c0_i32_1 = arith.constant 0 : i32
    %c0_i32_2 = arith.constant 0 : i32
    return %c0_i32, %c0_i32_0, %c0_i32_1 : i32, i32, i32
  }
  func.func @transform_4(%arg0: i32) -> (i32, i32, i32) {
    %c0_i32 = arith.constant 0 : i32
    %c0_i32_0 = arith.constant 0 : i32
    %c0_i32_1 = arith.constant 0 : i32
    %c0_i32_2 = arith.constant 0 : i32
    return %c0_i32, %c0_i32_0, %c0_i32_1 : i32, i32, i32
  }
  func.func @transform_5(%arg0: i32) -> (i32, i32, i32, i32) {
    %c0_i32 = arith.constant 0 : i32
    %c0_i32_0 = arith.constant 0 : i32
    %c0_i32_1 = arith.constant 0 : i32
    %c0_i32_2 = arith.constant 0 : i32
    %c0_i32_3 = arith.constant 0 : i32
    return %c0_i32, %c0_i32_0, %c0_i32_1, %c0_i32_2 : i32, i32, i32, i32
  }
  func.func @transform_6(%arg0: i32) -> (i32, i32, i32, i32) {
    %c0_i32 = arith.constant 0 : i32
    %c0_i32_0 = arith.constant 0 : i32
    %c0_i32_1 = arith.constant 0 : i32
    %c0_i32_2 = arith.constant 0 : i32
    %c0_i32_3 = arith.constant 0 : i32
    return %c0_i32, %c0_i32_0, %c0_i32_1, %c0_i32_2 : i32, i32, i32, i32
  }
  func.func @transform_7(%arg0: i32) -> (i32, i32, i32, i32) {
    %c0_i32 = arith.constant 0 : i32
    %c0_i32_0 = arith.constant 0 : i32
    %c0_i32_1 = arith.constant 0 : i32
    %c0_i32_2 = arith.constant 0 : i32
    %c0_i32_3 = arith.constant 0 : i32
    return %c0_i32, %c0_i32_0, %c0_i32_1, %c0_i32_2 : i32, i32, i32, i32
  }
  func.func @transform_8(%arg0: i32) -> (i32, i32, i32, i32) {
    %c0_i32 = arith.constant 0 : i32
    %c0_i32_0 = arith.constant 0 : i32
    %c0_i32_1 = arith.constant 0 : i32
    %c0_i32_2 = arith.constant 0 : i32
    %c0_i32_3 = arith.constant 0 : i32
    return %c0_i32, %c0_i32_0, %c0_i32_1, %c0_i32_2 : i32, i32, i32, i32
  }
  func.func @transform_9(%arg0: i32) -> (i32, i32, i32, i32) {
    %c0_i32 = arith.constant 0 : i32
    %c0_i32_0 = arith.constant 0 : i32
    %c0_i32_1 = arith.constant 0 : i32
    %c0_i32_2 = arith.constant 0 : i32
    %c0_i32_3 = arith.constant 0 : i32
    return %c0_i32, %c0_i32_0, %c0_i32_1, %c0_i32_2 : i32, i32, i32, i32
  }
  func.func @transform_10(%arg0: i32) -> (i32, i32, i32, i32) {
    %c0_i32 = arith.constant 0 : i32
    %c0_i32_0 = arith.constant 0 : i32
    %c0_i32_1 = arith.constant 0 : i32
    %c0_i32_2 = arith.constant 0 : i32
    %c0_i32_3 = arith.constant 0 : i32
    return %c0_i32, %c0_i32_0, %c0_i32_1, %c0_i32_2 : i32, i32, i32, i32
  }
  func.func @transform_11(%arg0: i32) -> (i32, i32, i32, i32) {
    %c0_i32 = arith.constant 0 : i32
    %c0_i32_0 = arith.constant 0 : i32
    %c0_i32_1 = arith.constant 0 : i32
    %c0_i32_2 = arith.constant 0 : i32
    %c0_i32_3 = arith.constant 0 : i32
    return %c0_i32, %c0_i32_0, %c0_i32_1, %c0_i32_2 : i32, i32, i32, i32
  }
  func.func @transform_12(%arg0: i32) -> (i32, i32, i32) {
    %c0_i32 = arith.constant 0 : i32
    %c0_i32_0 = arith.constant 0 : i32
    %c0_i32_1 = arith.constant 0 : i32
    %c0_i32_2 = arith.constant 0 : i32
    return %c0_i32, %c0_i32_0, %c0_i32_1 : i32, i32, i32
  }
  func.func @transform_13(%arg0: i32) -> (i32, i32, i32) {
    %c0_i32 = arith.constant 0 : i32
    %c0_i32_0 = arith.constant 0 : i32
    %c0_i32_1 = arith.constant 0 : i32
    %c0_i32_2 = arith.constant 0 : i32
    return %c0_i32, %c0_i32_0, %c0_i32_1 : i32, i32, i32
  }
  func.func @transform_14(%arg0: i32) -> (i32, i32, i32) {
    %c0_i32 = arith.constant 0 : i32
    %c0_i32_0 = arith.constant 0 : i32
    %c0_i32_1 = arith.constant 0 : i32
    %c0_i32_2 = arith.constant 0 : i32
    return %c0_i32, %c0_i32_0, %c0_i32_1 : i32, i32, i32
  }
  func.func @transform_15(%arg0: i32) -> (i32, i32, i32) {
    %c0_i32 = arith.constant 0 : i32
    %c0_i32_0 = arith.constant 0 : i32
    %c0_i32_1 = arith.constant 0 : i32
    %c0_i32_2 = arith.constant 0 : i32
    return %c0_i32, %c0_i32_0, %c0_i32_1 : i32, i32, i32
  }
  func.func @transform_16(%arg0: i32) -> (i32, i32, i32) {
    %c0_i32 = arith.constant 0 : i32
    %c0_i32_0 = arith.constant 0 : i32
    %c0_i32_1 = arith.constant 0 : i32
    %c0_i32_2 = arith.constant 0 : i32
    return %c0_i32, %c0_i32_0, %c0_i32_1 : i32, i32, i32
  }
  func.func @transform_17(%arg0: i32) -> (i32, i32, i32) {
    %c0_i32 = arith.constant 0 : i32
    %c0_i32_0 = arith.constant 0 : i32
    %c0_i32_1 = arith.constant 0 : i32
    %c0_i32_2 = arith.constant 0 : i32
    return %c0_i32, %c0_i32_0, %c0_i32_1 : i32, i32, i32
  }
  func.func @transform_18(%arg0: i32) -> (i32, i32, i32) {
    %c0_i32 = arith.constant 0 : i32
    %c0_i32_0 = arith.constant 0 : i32
    %c0_i32_1 = arith.constant 0 : i32
    %c0_i32_2 = arith.constant 0 : i32
    return %c0_i32, %c0_i32_0, %c0_i32_1 : i32, i32, i32
  }
  func.func @transform_19(%arg0: i32) -> (i32, i32) {
    %c0_i32 = arith.constant 0 : i32
    %c0_i32_0 = arith.constant 0 : i32
    %c0_i32_1 = arith.constant 0 : i32
    return %c0_i32, %c0_i32_0 : i32, i32
  }
  func.func @transform_20(%arg0: i32) -> (i32, i32) {
    %c0_i32 = arith.constant 0 : i32
    %c0_i32_0 = arith.constant 0 : i32
    %c0_i32_1 = arith.constant 0 : i32
    return %c0_i32, %c0_i32_0 : i32, i32
  }
  func.func @transform_21(%arg0: i32) -> (i32, i32) {
    %c0_i32 = arith.constant 0 : i32
    %c0_i32_0 = arith.constant 0 : i32
    %c0_i32_1 = arith.constant 0 : i32
    return %c0_i32, %c0_i32_0 : i32, i32
  }
  func.func @transform_22(%arg0: i32) -> (i32, i32) {
    %c0_i32 = arith.constant 0 : i32
    %c0_i32_0 = arith.constant 0 : i32
    %c0_i32_1 = arith.constant 0 : i32
    return %c0_i32, %c0_i32_0 : i32, i32
  }
  func.func @transform_23(%arg0: i32) -> (i32, i32, i32) {
    %c0_i32 = arith.constant 0 : i32
    %c0_i32_0 = arith.constant 0 : i32
    %c0_i32_1 = arith.constant 0 : i32
    return %arg0, %c0_i32, %c0_i32_0 : i32, i32, i32
  }
}

</mosaic_0001>

<bundles_post_ra>
// kernel: foundational_cv_model_forward.1
= control target key start
LH: loop header
LB: loop body
LE: loop exit
PB: predicated region body
PF: predicated region fallthrough
CT: control target
= control target key end

     0   :  { %s6281_s0 = inlined_call_operand.vmem [shape: bf16[2,5,192], index: 0, kind: input, shape index: {}]   ;;  %s6282_s1 = inlined_call_operand.vmem [shape: f32[5,32], index: 1, kind: input, shape index: {}]   ;;  %s6283_s2 = inlined_call_operand.vmem [shape: bf16[192,32], index: 2, kind: input, shape index: {}]   ;;  %s6284_s3 = inlined_call_operand.vmem [shape: f32[2,1,32], index: 3, kind: input, shape index: {}]   ;;  %s6285_s4 = inlined_call_operand.vmem [shape: f32[2,1,32], index: 4, kind: input, shape index: {}]   ;;  %s6286_s5 = inlined_call_operand.vmem [shape: bf16[2,4,32,8], index: 5, kind: input, shape index: {}]   ;;  %s6287_s6 = inlined_call_operand.vmem [shape: f32[2,4,1,8], index: 6, kind: input, shape index: {}]   ;;  %s6288_s7 = inlined_call_operand.vmem [shape: bf16[2,4,32,8], index: 7, kind: input, shape index: {}]   ;;  %s6289_s8 = inlined_call_operand.vmem [shape: f32[2,4,1,8], index: 8, kind: input, shape index: {}]   ;;  %s6290_s9 = inlined_call_operand.vmem [shape: bf16[2,4,32,8], index: 9, kind: input, shape index: {}]   ;;  %s6291_s10 = inlined_call_operand.vmem [shape: f32[2,4,1,8], index: 10, kind: input, shape index: {}]   ;;  %s6292_s11 = inlined_call_operand.vmem [shape: bf16[2,4,8,32], index: 11, kind: input, shape index: {}]   ;;  %s6293_s12 = inlined_call_operand.vmem [shape: f32[2,1,32], index: 12, kind: input, shape index: {}]   ;;  %s6294_s13 = inlined_call_operand.vmem [shape: f32[2,1,32], index: 13, kind: input, shape index: {}]   ;;  %s6295_s14 = inlined_call_operand.vmem [shape: f32[2,1,32], index: 14, kind: input, shape index: {}]   ;;  %s6296_s15 = inlined_call_operand.vmem [shape: bf16[2,32,64], index: 15, kind: input, shape index: {}]   ;;  %s6297_s16 = inlined_call_operand.vmem [shape: f32[2,1,64], index: 16, kind: input, shape index: {}]   ;;  %s6298_s17 = inlined_call_operand.vmem [shape: bf16[2,64,32], index: 17, kind: input, shape index: {}]   ;;  %s6299_s18 = inlined_call_operand.vmem [shape: f32[2,1,32], index: 18, kind: input, shape index: {}]   ;;  %s6300_s19 = inlined_call_operand.vmem [shape: f32[1,32], index: 19, kind: input, shape index: {}]   ;;  %s6301_s20 = inlined_call_operand.vmem [shape: f32[1,32], index: 20, kind: input, shape index: {}]   ;;  %s6302_s21 = inlined_call_operand.vmem [shape: bf16[32,32], index: 21, kind: input, shape index: {}]   ;;  %s6303_s22 = inlined_call_operand.vmem [shape: f32[1,32], index: 22, kind: input, shape index: {}]   ;;  %s6304_s23 = inlined_call_operand.hbm [shape: f32[2,1,32], index: 23, kind: output, shape index: {}]  }
   0x1   :  { %6322 = sst [smem:[#allocation11_spill]] %s6281_s0 }
   0x2   :  { %6323 = sst [smem:[#allocation12_spill]] %s6282_s1 }
   0x3   :  { %6324 = sst [smem:[#allocation13_spill]] %s6283_s2 }
   0x4   :  { %6325 = sst [smem:[#allocation14_spill]] %s6284_s3 }
   0x5   :  { %6326 = sst [smem:[#allocation15_spill]] %s6285_s4 }
   0x6   :  { %6327 = sst [smem:[#allocation16_spill]] %s6286_s5 }
   0x7   :  { %6328 = sst [smem:[#allocation17_spill]] %s6287_s6 }
   0x8   :  { %6329 = sst [smem:[#allocation18_spill]] %s6288_s7 }
   0x9   :  { %6330 = sst [smem:[#allocation19_spill]] %s6304_s23 }
   0xa   :  { %28 = vsyncpa [#allocation3], 0 }
   0xb   :  { %30 = vsyncpa [#allocation3 + $0x1], 0  ;;  %s5439_s4 = smov 0   ;;  %s5441_s30 = smov 0  }
   0xc   :  { %s5443_s24 = smov 0   ;;  %s5445_s25 = smov 0  }
   0xd LB: > { %6331 = sst [smem:[#allocation5_spill]] %s5300_s4  ;;  %s5460_s5 = sadd.s32 4294967295, %s5312_s25   ;;  %s5312_s25 = sphi %s5445_s25, %s6353_s25   ;;  %s5308_s24 = sphi %s5443_s24, %s6355_s24   ;;  %s5304_s30 = sphi %s5441_s30, %s6357_s30   ;;  %s5300_s4 = sphi %s5439_s4, %s6356_s4  }
   0xe   : > { %6332 = sst [smem:[#allocation6_spill]] %s5308_s24  ;;  %s4295_s1 = sadd.s32 4294967294, %s5312_s25  }
   0xf   : > { %6333 = sst [smem:[#allocation7_spill]] %s5312_s25  ;;  %s5464_s26 = sadd.s32 1, %s5312_s25  }
  0x10   : > { %6334 = sst [smem:[#allocation8_spill]] %s5464_s26  ;;  %s531_s2 = sadd.s32 1, %s5308_s24 }
  0x11   : > { %s528_s6 = ssub.s32 %s5312_s25, %s5464_s26  ;;  %p541_p0 = scmp.ne.s32.totalorder %s5308_s24, %s5304_s30 }
  0x12   : > { %p529_p1 = scmp.eq.s32.totalorder %s528_s6, 0  ;;  %p542_p2 = scmp.eq.s32.totalorder %s5460_s5, 1 }
  0x13   : > { %p547_p3 = scmp.ne.s32.totalorder %s5304_s30, %s5300_s4  ;;  %p548_p4 = scmp.eq.s32.totalorder %s4295_s1, 1 }
  0x14   : > { %s5475_s27 = scalar_select %p529_p1, %s5308_s24, %s531_s2  }
  0x15   : > { %p5477_p5 = por %p542_p2, %p541_p0  ;;  %p5481_p6 = por %p548_p4, %p547_p3 }
  0x16   : > { %6335 = sst [smem:[#allocation9_spill]] %s5475_s27  ;;  %p4298_p7 = scmp.ge.s32.totalorder %s5312_s25, 1 }
  0x17   : > { %s6337_s28 = scalar_select %p5481_p6, 1, 0 }
  0x18   : > { %p640_p8 = scmp.lt.s32.totalorder %s5312_s25, 3 }
  0x19   : > { %6338 = sst [smem:[#allocation10_spill]] %s6337_s28 }
  0x1a   : > { %p641_p9 = pnand %p4298_p7, %p640_p8 }
  0x1b   : > { %s6339_s0 = sld [smem:[#allocation13_spill]] (!%p641_p9)  ;;  %v5314_v1 = vmov (!%p641_p9), 0   ;;  %p703_p10 = scmp.lt.s32.totalorder (!%p641_p9), %s5460_s5, 1  ;;  %vm813_vm0 = vcmask (!%p641_p9), 523264   ;;  %vm859_vm1 = vcmask (!%p641_p9), 258048   ;;  %v5315_v30 = vmov (!%p641_p9), 0.0  }
  0x1c   : > { %644 = sbr.rel (%p641_p9) target bundleno = 5520 (0x1590), region = 112  ;;  %817 = vmatprep.subr.bf16.mxu0 (!%p641_p9), %v5314_v1  ;;  %s6340_s28 = sld [smem:[#allocation11_spill]] (!%p641_p9)  ;;  %4695 = vmatprep.subr.bf16.mxu1 (!%p641_p9), %v5315_v30  ;;  %vm5316_vm2 = vmmov (!%p641_p9), 0   ;;  %vm945_vm3 = vcmask (!%p641_p9), 261120   ;;  %v5141_v43 = vld [vmem:[%s6290_s9] sm:$0xff] (!%p641_p9)   ;;  %v5143_v46 = vld [vmem:[%s6290_s9 + $0x8] sm:$0xff] (!%p641_p9)  }
  0x1d   : > { %s6343_s1 = sld [smem:[#allocation18_spill]] (!%p641_p9)  ;;  %4699 = vmatprep.mubr.msk.bf16.mxu1 (!%p641_p9), %vm5316_vm2, %v5315_v30  ;;  %s6346_s2 = sld [smem:[#allocation15_spill]] (!%p641_p9)  ;;  %v5145_v48 = vld [vmem:[%s6290_s9 + $0x20] sm:$0xff] (!%p641_p9)   ;;  %v5147_v50 = vld [vmem:[%s6290_s9 + $0x28] sm:$0xff] (!%p641_p9)   ;;  %v5156_v59 = vld [vmem:[%s6290_s9 + $0x10] sm:$0xff] (!%p641_p9)   ;;  %vm1657_vm4 = vcmask (!%p641_p9), 64512  }
  0x1e   : > { %v5157_v60 = vld [vmem:[%s6290_s9 + $0x18] sm:$0xff] (!%p641_p9)   ;;  %v5158_v61 = vld [vmem:[%s6290_s9 + $0x30] sm:$0xff] (!%p641_p9)   ;;  %s6347_s24 = sld [smem:[#allocation17_spill]] (!%p641_p9)  ;;  %vm1899_vm5 = vcmask (!%p641_p9), 1041408   ;;  %vm1900_vm6 = vcmask (!%p641_p9), 1042432   ;;  %vm1842_vm7 = vcmask (!%p641_p9), 36864  }
  0x1f   : > { %v5159_v62 = vld [vmem:[%s6290_s9 + $0x38] sm:$0xff] (!%p641_p9)   ;;  %vm1895_vm8 = vcmask (!%p641_p9), 39936   ;;  %vm2095_vm9 = vcmask (!%p641_p9), 1043456   ;;  %vm4148_vm12 = vcmask (!%p641_p9), 253952   ;;  %s701_s29 = sand.u32 (!%p641_p9), 1, %s5304_s30  }
  0x20   : > { %s702_s3 = scalar_lea.vmem (!%p641_p9), [#allocation2], %s701_s29 }
  0x21   : > { %v5122_v0 = vld [vmem:[%s6339_s0] sm:$0xff] (!%p641_p9)   ;;  %v5123_v2 = vld [vmem:[%s6339_s0 + $0x8] sm:$0xff] (!%p641_p9)   ;;  %v5124_v3 = vld [vmem:[%s6339_s0 + $0x10] sm:$0xff] (!%p641_p9)  }
  0x22   : > { %818 = vmatpush1.bf16.msra.mxu0 (!%p641_p9), %v5122_v0  ;;  %v5125_v4 = vld [vmem:[%s6339_s0 + $0x18] sm:$0xff] (!%p641_p9)   ;;  %v5126_v5 = vld [vmem:[%s6339_s0 + $0x20] sm:$0xff] (!%p641_p9)   ;;  %v5127_v8 = vld [vmem:[%s6339_s0 + $0x28] sm:$0xff] (!%p641_p9)  }
  0x23   : > { %819 = vmatprep.subr.bf16.mxu0 %v5314_v1  ;;  %s704_s6 = scalar_select %p703_p10, %s5460_s5, 1  ;;  %v5128_v9 = vld [vmem:[%s6339_s0 + $0x30] sm:$0xff]   ;;  %v5129_v10 = vld [vmem:[%s6339_s0 + $0x38] sm:$0xff]   ;;  %v5130_v11 = vld [vmem:[%s6339_s0 + $0x40] sm:$0xff]  }
  0x24   : > { %v5131_v12 = vld [vmem:[%s6339_s0 + $0x48] sm:$0xff]   ;;  %v5132_v13 = vld [vmem:[%s6339_s0 + $0x50] sm:$0xff]   ;;  %v5133_v14 = vld [vmem:[%s6339_s0 + $0x58] sm:$0xff]   ;;  %s6348_s27 = smov %s6347_s24  ;;  %s4552_s0 = sshll.u32 %s5460_s5, 4 }
  0x25   : > { %s4555_s26 = sshll.u32 %s704_s6, 3  ;;  %s6342_s6 = sld [smem:[#allocation16_spill]]  ;;  %v5137_v29 = vld [vmem:[%s6343_s1 + $0x20] sm:$0xff]   ;;  %v5139_v32 = vld [vmem:[%s6343_s1 + $0x28] sm:$0xff]   ;;  %v5152_v55 = vld [vmem:[%s6343_s1 + $0x10] sm:$0xff]  }
  0x26   : > { %820 = vmatpush1.bf16.msra.mxu0 %v5123_v2  ;;  %s707_s4 = scalar_lea.vmem %s6340_s28, %s4555_s26  ;;  %s6341_s26 = sld [smem:[#allocation12_spill]]  ;;  %v4317_v39 = vld [vmem:[%s6346_s2] ss:$0 sm:$0xff]  ;;  %v5151_v54 = vld [vmem:[%s6343_s1 + $0x8] sm:$0xff]   ;;  %v5153_v56 = vld [vmem:[%s6343_s1 + $0x18] sm:$0xff]  }
  0x27   : > { %821 = vmatprep.subr.bf16.mxu0 %v5314_v1  ;;  %v709_v6 = vld [vmem:[%s707_s4] sm:$0x77]  ;;  %s6344_s4 = sld [smem:[#allocation14_spill]]  ;;  %v5154_v57 = vld [vmem:[%s6343_s1 + $0x30] sm:$0xff]   ;;  %v5155_v58 = vld [vmem:[%s6343_s1 + $0x38] sm:$0xff]   ;;  %s5318_s5 = smov [#allocation2]  }
  0x28   : > { %v4302_v7 = vcombine.high %v709_v6, %v709_v6  ;;  %v4301_v15 = vcombine.low %v709_v6, %v709_v6  ;;  %v5150_v53 = vld [vmem:[%s6343_s1] sm:$0xff]  }
  0x2a   : > { %822 = vmatpush1.bf16.msra.mxu0 %v5124_v3  ;;  %4315 = vmatprep.mubr.msk.bf16.mxu0 %vm813_vm0, %v4302_v7 }
  0x2b   : > { %823 = vmatprep.subr.bf16.mxu0 %v5314_v1  ;;  %v5136_v28 = vld [vmem:[%s6342_s6] sm:$0xff]   ;;  %v5138_v31 = vld [vmem:[%s6342_s6 + $0x8] sm:$0xff]   ;;  %v5140_v42 = vld [vmem:[%s6342_s6 + $0x10] sm:$0xff]  }
  0x2c   : > { %v734_v16 = vld [vmem:[%s6341_s26] sm:$0x1f]  ;;  %4696 = vmatpush3.bf16.msra.mxu1 %v5136_v28  ;;  %v5142_v45 = vld [vmem:[%s6342_s6 + $0x18] sm:$0xff]   ;;  %v5146_v49 = vld [vmem:[%s6342_s6 + $0x28] sm:$0xff]   ;;  %s4228_s26 = scalar_lea.sflag [#allocation3], %s701_s29 }
  0x2d   : > { %4697 = vmatprep.subr.bf16.mxu1 %v5315_v30  ;;  %s6345_s28 = smov %s6344_s4  ;;  %v4316_v37 = vld [vmem:[%s6344_s4] ss:$0 sm:$0xff]  ;;  %v5148_v51 = vld [vmem:[%s6342_s6 + $0x30] sm:$0xff]   ;;  %v5149_v52 = vld [vmem:[%s6342_s6 + $0x38] sm:$0xff]  }
  0x2e   : > { %824 = vmatpush1.bf16.msra.mxu0 %v5125_v4  ;;  %v5144_v47 = vld [vmem:[%s6342_s6 + $0x20] sm:$0xff]  }
  0x2f   : > { %825 = vmatprep.subr.bf16.mxu0 %v5314_v1  ;;  %v4334_v28 = vld [vmem:[%s6289_s8] ss:$0 sm:$0xff] }
  0x30   : > { %4698 = vmatpush3.bf16.msra.mxu1 %v5138_v31 }
  0x31   : > { %4703 = vmatprep.subr.bf16.mxu1 %v5315_v30 }
  0x32   : > { %826 = vmatpush1.bf16.msra.mxu0 %v5126_v5 }
  0x33   : > { %827 = vmatprep.subr.bf16.mxu0 %v5314_v1 }
  0x36   : > { %828 = vmatpush1.bf16.msra.mxu0 %v5127_v8 }
  0x37   : > { %829 = vmatprep.subr.bf16.mxu0 %v5314_v1 }
  0x3a   : > { %830 = vmatpush1.bf16.msra.mxu0 %v5128_v9 }
  0x3b   : > { %831 = vmatprep.subr.bf16.mxu0 %v5314_v1 }
  0x3e   : > { %832 = vmatpush1.bf16.msra.mxu0 %v5129_v10 }
  0x3f   : > { %833 = vmatprep.subr.bf16.mxu0 %v5314_v1 }
  0x42   : > { %834 = vmatpush1.bf16.msra.mxu0 %v5130_v11 }
  0x43   : > { %835 = vmatprep.subr.bf16.mxu0 %v5314_v1 }
  0x46   : > { %836 = vmatpush1.bf16.msra.mxu0 %v5131_v12 }
  0x47   : > { %837 = vmatprep.subr.bf16.mxu0 %v5314_v1 }
  0x4a   : > { %838 = vmatpush1.bf16.msra.mxu0 %v5132_v13 }
  0x4b   : > { %839 = vmatprep.subr.bf16.mxu0 %v5314_v1 }
  0x4e   : > { %840 = vmatpush1.bf16.msra.mxu0 %v5133_v14 }
  0x4f   : > { %4743 = vmatprep.subr.bf16.mxu0 %v5315_v30 }
  0x51   : > { %850 = vmatmul.mubr.bf16.vlgmr.msra.gmra.mrb[0].mxu0 %v4301_v15 }
  0x52   : > { %4744 = vmatpush3.bf16.msra.mxu0 %v5137_v29  ;;  %4747 = vmatprep.mubr.msk.bf16.mxu0 %vm5316_vm2, %v5315_v30 }
  0x53   : > { %4745 = vmatprep.subr.bf16.mxu0 %v5315_v30 }
  0x56   : > { %4746 = vmatpush3.bf16.msra.mxu0 %v5139_v32 }
  0x57   : > { %4759 = vmatprep.subr.bf16.mxu0 %v5315_v30 }
 0x124   : > { %v851_v17 = vpop.f32.mrb[0].mxu0 }
 0x125   : > { %v5532_v18 = vadd.f32 %v851_v17, %v734_v16  ;;  %v853_v19 = vpop.f32.mrb[1].mxu0 }
 0x126   : > { %v854_v20 = vpop.f32.mrb[2].mxu0 }
 0x127   : > { %v855_v21 = vpop.f32.mrb[3].mxu0  ;;  %v860_v22 = vsel %vm859_vm1, %v5532_v18, 0.0 }
 0x128   : > { %861 = vadd.xlane.f32.xlu0 %v860_v22 }
 0x1b5   : > { %v862_v23 = vpop.xlane.xlu0 %861 }
 0x1b6   : > { %v864_v24 = vmul.f32 0.03125, %v862_v23 }
 0x1b8   : > { %v865_v25 = vsub.f32 %v5532_v18, %v864_v24 }
 0x1ba   : > { %v866_v26 = vmul.f32 %v865_v25, %v865_v25 }
 0x1bc   : > { %v867_v27 = vsel %vm859_vm1, %v866_v26, 0.0 }
 0x1bd   : > { %868 = vadd.xlane.f32.xlu0 %v867_v27 }
 0x24a   : > { %v869_v33 = vpop.xlane.xlu0 %868 }
 0x24b   : > { %v870_v34 = vmul.f32 0.03125, %v869_v33  ;;  %v4336_v33 = vld [vmem:[%s6289_s8 + $0x2] ss:$0 sm:$0xff] }
 0x24d   : > { %v871_v35 = vadd.f32 1e-12, %v870_v34 }
 0x24f   : > { %5198 = vrsqrt.f32 %v871_v35 }
 0x259   : > { %v5199_v36 = vpop.eup %5198 }
 0x25a   : > { %v873_v38 = vmul.f32 %v5199_v36, %v865_v25 }
 0x25c   : > { %v880_v40 = vmul.f32 %v4316_v37, %v873_v38  ;;  %v4318_v37 = vld [vmem:[%s6347_s24] ss:$0 sm:$0xff]  ;;  %s4240_s24 = sshll.u32 %s702_s3, 4  ;;  %s6240_s24 = int_to_ptr.vmem [resolvable:$true] %s4240_s24 }
 0x25d   : > { %s5250_s4 = scalar_lea.vmem %s6240_s24, 16 }
 0x25e   : > { %v887_v41 = vadd.f32 %v4317_v39, %v880_v40  ;;  %v4335_v40 = vld [vmem:[%s6289_s8 + $0x1] ss:$0 sm:$0xff]  ;;  %p5251_p11 = scmp.ne.s32.totalorder %s6240_s24, %s5250_s4 }
 0x260   : > { %v5572_v44 = vpack.c.bf16 %v887_v41, %v887_v41  ;;  %p5252_p12 = pnand %p5251_p11, %p5477_p5 }
 0x262   : > { %4700 = vmatmul.mubr.msk.bf16.vlgmr.msra.gmra.mrb[0].mxu1 %vm945_vm3, %v5572_v44  ;;  %4748 = vmatmul.mubr.msk.bf16.vlgmr.msra.gmra.mrb[4].mxu0 %vm945_vm3, %v5572_v44  ;;  %p5253_p13 = pneg %p5252_p12 }
 0x263   : > { %4704 = vmatpush3.bf16.msra.mxu1 %v5140_v42  ;;  %4760 = vmatpush3.bf16.msra.mxu0 %v5141_v43 }
 0x264   : > { %4705 = vmatprep.subr.bf16.mxu1 %v5315_v30  ;;  %4761 = vmatprep.subr.bf16.mxu0 %v5315_v30 }
 0x265   : > { %4707 = vmatprep.mubr.msk.bf16.mxu1 %vm5316_vm2, %v5315_v30  ;;  %4763 = vmatprep.mubr.msk.bf16.mxu0 %vm5316_vm2, %v5315_v30 }
 0x267   : > { %4706 = vmatpush3.bf16.msra.mxu1 %v5142_v45  ;;  %4762 = vmatpush3.bf16.msra.mxu0 %v5143_v46 }
 0x268   : > { %4711 = vmatprep.subr.bf16.mxu1 %v5315_v30  ;;  %4775 = vmatprep.subr.bf16.mxu0 %v5315_v30 }
 0x26a   : > { %4708 = vmatmul.mubr.msk.bf16.vlgmr.msra.gmra.mrb[4].mxu1 %vm945_vm3, %v5572_v44  ;;  %4764 = vmatmul.mubr.msk.bf16.vlgmr.msra.gmra.mrb[8].mxu0 %vm945_vm3, %v5572_v44 }
 0x26b   : > { %4712 = vmatpush3.bf16.msra.mxu1 %v5144_v47  ;;  %4776 = vmatpush3.bf16.msra.mxu0 %v5145_v48 }
 0x26c   : > { %4713 = vmatprep.subr.bf16.mxu1 %v5315_v30  ;;  %4777 = vmatprep.subr.bf16.mxu0 %v5315_v30 }
 0x26d   : > { %4715 = vmatprep.mubr.msk.bf16.mxu1 %vm5316_vm2, %v5315_v30  ;;  %4779 = vmatprep.mubr.msk.bf16.mxu0 %vm5316_vm2, %v5315_v30 }
 0x26f   : > { %4714 = vmatpush3.bf16.msra.mxu1 %v5146_v49  ;;  %4778 = vmatpush3.bf16.msra.mxu0 %v5147_v50 }
 0x270   : > { %4719 = vmatprep.subr.bf16.mxu1 %v5315_v30  ;;  %4791 = vmatprep.subr.bf16.mxu0 %v5315_v30 }
 0x272   : > { %4716 = vmatmul.mubr.msk.bf16.vlgmr.msra.gmra.mrb[8].mxu1 %vm945_vm3, %v5572_v44  ;;  %4780 = vmatmul.mubr.msk.bf16.vlgmr.msra.gmra.mrb[12].mxu0 %vm945_vm3, %v5572_v44 }
 0x273   : > { %4720 = vmatpush3.bf16.msra.mxu1 %v5148_v51  ;;  %4723 = vmatprep.mubr.msk.bf16.mxu1 %vm5316_vm2, %v5315_v30  ;;  %v4319_v51 = vld [vmem:[%s6348_s27 + $0x1] ss:$0 sm:$0xff] }
 0x274   : > { %4721 = vmatprep.subr.bf16.mxu1 %v5315_v30  ;;  %4793 = vmatprep.mubr.msk.bf16.mxu0 %vm5316_vm2, %v5315_v30 }
 0x277   : > { %4722 = vmatpush3.bf16.msra.mxu1 %v5149_v52 }
 0x278   : > { %4727 = vmatprep.subr.bf16.mxu1 %v5315_v30 }
 0x27a   : > { %4724 = vmatmul.mubr.msk.bf16.vlgmr.msra.gmra.mrb[12].mxu1 %vm945_vm3, %v5572_v44 }
 0x27b   : > { %4728 = vmatpush3.bf16.msra.mxu1 %v5150_v53  ;;  %4731 = vmatprep.mubr.msk.bf16.mxu1 %vm5316_vm2, %v5315_v30  ;;  %v4320_v53 = vld [vmem:[%s6348_s27 + $0x2] ss:$0 sm:$0xff] }
 0x27c   : > { %4729 = vmatprep.subr.bf16.mxu1 %v5315_v30 }
 0x27f   : > { %4730 = vmatpush3.bf16.msra.mxu1 %v5151_v54 }
 0x280   : > { %4735 = vmatprep.subr.bf16.mxu1 %v5315_v30 }
 0x282   : > { %4732 = vmatmul.mubr.msk.bf16.vlgmr.msra.gmra.mrb[16].mxu1 %vm945_vm3, %v5572_v44 }
 0x283   : > { %4736 = vmatpush3.bf16.msra.mxu1 %v5152_v55  ;;  %4739 = vmatprep.mubr.msk.bf16.mxu1 %vm5316_vm2, %v5315_v30 }
 0x284   : > { %4737 = vmatprep.subr.bf16.mxu1 %v5315_v30 }
 0x287   : > { %4738 = vmatpush3.bf16.msra.mxu1 %v5153_v56  ;;  %v5317_v56 = vmov 65535  }
 0x288   : > { %4751 = vmatprep.subr.bf16.mxu1 %v5315_v30 }
 0x28a   : > { %4740 = vmatmul.mubr.msk.bf16.vlgmr.msra.gmra.mrb[20].mxu1 %vm945_vm3, %v5572_v44 }
 0x28b   : > { %4752 = vmatpush3.bf16.msra.mxu1 %v5154_v57  ;;  %4755 = vmatprep.mubr.msk.bf16.mxu1 %vm5316_vm2, %v5315_v30  ;;  %v1901_v57 = vsel %vm1899_vm5, 4294967295, %v5317_v56 }
 0x28c   : > { %4753 = vmatprep.subr.bf16.mxu1 %v5315_v30 }
 0x28f   : > { %4754 = vmatpush3.bf16.msra.mxu1 %v5155_v58  ;;  %v4337_v58 = vld [vmem:[%s6289_s8 + $0x3] ss:$0 sm:$0xff] }
 0x290   : > { %4767 = vmatprep.subr.bf16.mxu1 %v5315_v30 }
 0x292   : > { %4756 = vmatmul.mubr.msk.bf16.vlgmr.msra.gmra.mrb[24].mxu1 %vm945_vm3, %v5572_v44 }
 0x293   : > { %4768 = vmatpush3.bf16.msra.mxu1 %v5156_v59  ;;  %4771 = vmatprep.mubr.msk.bf16.mxu1 %vm5316_vm2, %v5315_v30 }
 0x294   : > { %4769 = vmatprep.subr.bf16.mxu1 %v5315_v30 }
 0x297   : > { %4770 = vmatpush3.bf16.msra.mxu1 %v5157_v60 }
 0x298   : > { %4783 = vmatprep.subr.bf16.mxu1 %v5315_v30 }
 0x29a   : > { %4772 = vmatmul.mubr.msk.bf16.vlgmr.msra.gmra.mrb[28].mxu1 %vm945_vm3, %v5572_v44 }
 0x29b   : > { %4784 = vmatpush3.bf16.msra.mxu1 %v5158_v61  ;;  %4787 = vmatprep.mubr.msk.bf16.mxu1 %vm5316_vm2, %v5315_v30 }
 0x29c   : > { %4785 = vmatprep.subr.bf16.mxu1 %v5315_v30 }
 0x29f   : > { %4786 = vmatpush3.bf16.msra.mxu1 %v5159_v62 }
 0x2a0   : > { %4797 = vmatprep.subr.bf16.mxu1 %v5315_v30 }
 0x2a2   : > { %4788 = vmatmul.mubr.msk.bf16.vlgmr.msra.gmra.mrb[32].mxu1 %vm945_vm3, %v5572_v44  ;;  %v4350_v44 = vld [vmem:[%s6291_s10] ss:$0 sm:$0xff] }
 0x2a3   : > { %4799 = vmatprep.mubr.msk.bf16.mxu1 %vm5316_vm2, %v5315_v30 }
 0x335   : > { %v983_v63 = vpop.f32.mrb[0].mxu1  ;;  %v1339_v0 = vpop.f32.mrb[4].mxu0 }
 0x336   : > { %v4701_v1 = vpop.f32.mrb[1].mxu1  ;;  %v4749_v2 = vpop.f32.mrb[5].mxu0  ;;  %v1340_v38 = vadd.f32 %v4336_v33, %v1339_v0  ;;  %v984_v41 = vadd.f32 %v4318_v37, %v983_v63  ;;  %v5733_v63 = vsel %vm1900_vm6, %v1901_v57, 0 }
 0x337   : > { %v986_v3 = vpop.f32.mrb[2].mxu1  ;;  %v1342_v4 = vpop.f32.mrb[6].mxu0 }
 0x338   : > { %v4702_v5 = vpop.f32.mrb[3].mxu1  ;;  %v4750_v6 = vpop.f32.mrb[7].mxu0  ;;  %v1655_v43 = vpack.c.bf16 %v1340_v38, %v1340_v38  ;;  %v1649_v48 = vpack.c.bf16 %v984_v41, %v984_v41 }
 0x33a   : > { %v1754_v54 = vsel %vm1657_vm4, %v1655_v43, 0 }
 0x33d   : > { %v1035_v7 = vpop.f32.mrb[4].mxu1  ;;  %v1487_v8 = vpop.f32.mrb[8].mxu0 }
 0x33e   : > { %v4709_v9 = vpop.f32.mrb[5].mxu1  ;;  %v4765_v10 = vpop.f32.mrb[9].mxu0  ;;  %v1488_v52 = vadd.f32 %v4350_v44, %v1487_v8  ;;  %v1036_v59 = vadd.f32 %v4319_v51, %v1035_v7  ;;  %v4321_v8 = vld [vmem:[%s6348_s27 + $0x3] ss:$0 sm:$0xff] }
 0x33f   : > { %v1038_v11 = vpop.f32.mrb[6].mxu1  ;;  %v1490_v12 = vpop.f32.mrb[10].mxu0  ;;  %v4351_v10 = vld [vmem:[%s6291_s10 + $0x1] ss:$0 sm:$0xff] }
 0x340   : > { %v4710_v13 = vpop.f32.mrb[7].mxu1  ;;  %v4766_v14 = vpop.f32.mrb[11].mxu0  ;;  %v1891_v61 = vpack.c.bf16 %v1488_v52, %v1488_v52  ;;  %v1650_v3 = vpack.c.bf16 %v1036_v59, %v1036_v59 }
 0x342   : > { %v1904_v7 = vand.u32 %v5733_v63, %v1891_v61 }
 0x345   : > { %v1087_v15 = vpop.f32.mrb[8].mxu1  ;;  %v5696_v16 = vpop.f32.mrb[12].mxu0 }
 0x346   : > { %v4717_v17 = vpop.f32.mrb[9].mxu1  ;;  %v4781_v19 = vpop.f32.mrb[13].mxu0  ;;  %v1088_v60 = vadd.f32 %v4320_v53, %v1087_v15 }
 0x347   : > { %v1090_v20 = vpop.f32.mrb[10].mxu1  ;;  %v1594_v21 = vpop.f32.mrb[14].mxu0 }
 0x348   : > { %v4718_v22 = vpop.f32.mrb[11].mxu1  ;;  %v4782_v23 = vpop.f32.mrb[15].mxu0  ;;  %v1651_v4 = vpack.c.bf16 %v1088_v60, %v1088_v60 }
 0x34d   : > { %v5698_v24 = vpop.f32.mrb[12].mxu1 }
 0x34e   : > { %v4725_v25 = vpop.f32.mrb[13].mxu1  ;;  %v1140_v11 = vadd.f32 %v4321_v8, %v5698_v24 }
 0x34f   : > { %v1142_v26 = vpop.f32.mrb[14].mxu1 }
 0x350   : > { %v4726_v27 = vpop.f32.mrb[15].mxu1  ;;  %v1652_v17 = vpack.c.bf16 %v1140_v11, %v1140_v11 }
 0x355   : > { %v1235_v29 = vpop.f32.mrb[16].mxu1 }
 0x356   : > { %v1236_v31 = vadd.f32 %v4334_v28, %v1235_v29  ;;  %v4733_v32 = vpop.f32.mrb[17].mxu1 }
 0x357   : > { %v1238_v34 = vpop.f32.mrb[18].mxu1 }
 0x358   : > { %v1653_v35 = vpack.c.bf16 %v1236_v31, %v1236_v31  ;;  %v4734_v36 = vpop.f32.mrb[19].mxu1 }
 0x35a   : > { %v1662_v39 = vsel %vm1657_vm4, %v1653_v35, 0 }
 0x35b   : > { %4792 = vmatpush3.bf16.xpose.msra.mxu0 %v1662_v39 }
 0x35c   : > { %4803 = vmatprep.subr.bf16.mxu0 %v5315_v30 }
 0x35d   : > { %v1287_v42 = vpop.f32.mrb[20].mxu1 }
 0x35e   : > { %v1288_v45 = vadd.f32 %v4335_v40, %v1287_v42  ;;  %v4741_v46 = vpop.f32.mrb[21].mxu1 }
 0x35f   : > { %v1290_v47 = vpop.f32.mrb[22].mxu1 }
 0x360   : > { %v1654_v49 = vpack.c.bf16 %v1288_v45, %v1288_v45  ;;  %v4742_v50 = vpop.f32.mrb[23].mxu1 }
 0x362   : > { %v1708_v55 = vsel %vm1657_vm4, %v1654_v49, 0  ;;  %4794 = vmatmul.mubr.msk.bf16.vlgmr.msra.gmra.mrb[16].mxu0 %vm1657_vm4, %v1649_v48 }
 0x363   : > { %4798 = vmatpush3.bf16.xpose.msra.mxu1 %v1708_v55  ;;  %4804 = vmatpush3.bf16.xpose.msra.mxu0 %v1754_v54 }
 0x364   : > { %4805 = vmatprep.mubr.msk.bf16.mxu0 %vm5316_vm2, %v5315_v30  ;;  %4809 = vmatprep.subr.bf16.mxu1 %v5315_v30 }
 0x365   : > { %v1391_v62 = vpop.f32.mrb[24].mxu1  ;;  %4815 = vmatprep.subr.bf16.mxu0 %v5315_v30 }
 0x366   : > { %v1392_v0 = vadd.f32 %v4337_v58, %v1391_v62  ;;  %v4757_v1 = vpop.f32.mrb[25].mxu1 }
 0x367   : > { %v1394_v2 = vpop.f32.mrb[26].mxu1 }
 0x368   : > { %v1656_v5 = vpack.c.bf16 %v1392_v0, %v1392_v0  ;;  %v4758_v6 = vpop.f32.mrb[27].mxu1 }
 0x36a   : > { %v1800_v9 = vsel %vm1657_vm4, %v1656_v5, 0  ;;  %4800 = vmatmul.mubr.msk.bf16.vlgmr.msra.gmra.mrb[36].mxu1 %vm1657_vm4, %v1650_v3  ;;  %4806 = vmatmul.mubr.msk.bf16.vlgmr.msra.gmra.mrb[20].mxu0 %vm1657_vm4, %v1651_v4  ;;  %v4352_v5 = vld [vmem:[%s6291_s10 + $0x2] ss:$0 sm:$0xff] }
 0x36b   : > { %4810 = vmatpush3.bf16.xpose.msra.mxu1 %v1800_v9  ;;  %4816 = vmatpush3.bf16.msra.mxu0 %v1904_v7  ;;  %v1592_v6 = vadd.f32 %v4352_v5, %v5696_v16 }
 0x36c   : > { %4811 = vmatprep.mubr.msk.bf16.mxu1 %vm5316_vm2, %v5315_v30  ;;  %4821 = vmatprep.subr.bf16.mxu1 %v5315_v30 }
 0x36d   : > { %v1539_v12 = vpop.f32.mrb[28].mxu1  ;;  %4817 = vmatprep.mubr.msk.bf16.mxu0 %vm5316_vm2, %v5315_v30  ;;  %4827 = vmatprep.subr.bf16.mxu0 %v5315_v30 }
 0x36e   : > { %v1540_v13 = vadd.f32 %v4351_v10, %v1539_v12  ;;  %v4773_v14 = vpop.f32.mrb[29].mxu1  ;;  %v1893_v10 = vpack.c.bf16 %v1592_v6, %v1592_v6  ;;  %v4353_v12 = vld [vmem:[%s6291_s10 + $0x3] ss:$0 sm:$0xff] }
 0x36f   : > { %v1542_v15 = vpop.f32.mrb[30].mxu1 }
 0x370   : > { %v1892_v19 = vpack.c.bf16 %v1540_v13, %v1540_v13  ;;  %v4774_v20 = vpop.f32.mrb[31].mxu1  ;;  %v1996_v14 = vand.u32 %v5733_v63, %v1893_v10 }
 0x372   : > { %v1950_v21 = vand.u32 %v5733_v63, %v1892_v19  ;;  %4812 = vmatmul.mubr.msk.bf16.vlgmr.msra.gmra.mrb[40].mxu1 %vm1657_vm4, %v1652_v17 }
 0x373   : > { %4823 = vmatprep.mubr.msk.bf16.mxu1 %vm5316_vm2, %v5315_v30 }
 0x374   : > { %4822 = vmatpush3.bf16.msra.mxu1 %v1950_v21 }
 0x375   : > { %v5756_v22 = vpop.f32.mrb[32].mxu1  ;;  %4833 = vmatprep.subr.bf16.mxu1 %v5315_v30 }
 0x376   : > { %v4789_v23 = vpop.f32.mrb[33].mxu1  ;;  %v1644_v15 = vadd.f32 %v4353_v12, %v5756_v22 }
 0x377   : > { %v1646_v24 = vpop.f32.mrb[34].mxu1 }
 0x378   : > { %v4790_v25 = vpop.f32.mrb[35].mxu1  ;;  %v1894_v20 = vpack.c.bf16 %v1644_v15, %v1644_v15 }
 0x435   : > { %v1698_v26 = vpop.f32.mrb[16].mxu0 }
 0x436   : > { %v4795_v27 = vpop.f32.mrb[17].mxu0  ;;  %v1843_v28 = vsel %vm1842_vm7, %v1698_v26, -inf }
 0x437   : > { %1844 = vmax.xlane.f32.xlu1 %v1843_v28  ;;  %v1701_v29 = vpop.f32.mrb[18].mxu0 }
 0x438   : > { %v4796_v31 = vpop.f32.mrb[19].mxu0  ;;  %v2088_v29 = vld [vmem:[%s6292_s11] sm:$0xf] }
 0x439   : > { %v2097_v31 = vsel %vm2095_vm9, %v2088_v29, 0 }
 0x43d   : > { %v1744_v32 = vpop.f32.mrb[36].mxu1  ;;  %v1790_v33 = vpop.f32.mrb[20].mxu0 }
 0x43e   : > { %v4801_v34 = vpop.f32.mrb[37].mxu1  ;;  %v4807_v35 = vpop.f32.mrb[21].mxu0  ;;  %v1849_v36 = vsel %vm1842_vm7, %v1790_v33, -inf  ;;  %v1846_v37 = vsel %vm1842_vm7, %v1744_v32, -inf }
 0x43f   : > { %1850 = vmax.xlane.f32.xlu0 %v1849_v36  ;;  %v1793_v38 = vpop.f32.mrb[22].mxu0  ;;  %1847 = vmax.xlane.f32.xlu1 %v1846_v37  ;;  %v1747_v39 = vpop.f32.mrb[38].mxu1  ;;  %v2090_v34 = vld [vmem:[%s6292_s11 + $0x8] sm:$0xf] }
 0x440   : > { %v4802_v40 = vpop.f32.mrb[39].mxu1  ;;  %v4808_v41 = vpop.f32.mrb[23].mxu0  ;;  %v2189_v38 = vsel %vm2095_vm9, %v2090_v34, 0  ;;  %v4379_v34 = vld [vmem:[%s6294_s13] ss:$0 sm:$0xff] }
 0x441   : > { %v2091_v41 = vld [vmem:[%s6292_s11 + $0xc] sm:$0xf] }
 0x445   : > { %v1836_v42 = vpop.f32.mrb[40].mxu1 }
 0x446   : > { %v4813_v43 = vpop.f32.mrb[41].mxu1  ;;  %v1852_v44 = vsel %vm1842_vm7, %v1836_v42, -inf }
 0x447   : > { %1853 = vmax.xlane.f32.xlu1 %v1852_v44  ;;  %v1839_v45 = vpop.f32.mrb[42].mxu1 }
 0x448   : > { %v4814_v46 = vpop.f32.mrb[43].mxu1 }
 0x4c4   : > { %v1845_v47 = vpop.xlane.xlu1 %1844 }
 0x4c5   : > { %v1855_v48 = vsub.f32 %v1698_v26, %v1845_v47  ;;  %v2042_v26 = vand.u32 %v5733_v63, %v1894_v20 }
 0x4c7   : > { %v1859_v49 = vmul.f32 1.442695, %v1855_v48 }
 0x4c9   : > { %5200 = vpow2.f32 %v1859_v49  ;;  %v2235_v49 = vsel %vm2095_vm9, %v2091_v41, 0  ;;  %v5163_v41 = vld [vmem:[%s6298_s17 + $0x8] sm:$0xff]  }
 0x4cc   : > { %v1851_v50 = vpop.xlane.xlu0 %1850  ;;  %v1848_v51 = vpop.xlane.xlu1 %1847 }
 0x4cd   : > { %v1857_v52 = vsub.f32 %v1790_v33, %v1851_v50  ;;  %v1856_v53 = vsub.f32 %v1744_v32, %v1848_v51  ;;  %v2089_v32 = vld [vmem:[%s6292_s11 + $0x4] sm:$0xf] }
 0x4ce   : > { %v2143_v33 = vsel %vm2095_vm9, %v2089_v32, 0 }
 0x4cf   : > { %v1863_v54 = vmul.f32 1.442695, %v1857_v52  ;;  %v1861_v55 = vmul.f32 1.442695, %v1856_v53 }
 0x4d1   : > { %5202 = vpow2.f32 %v1863_v54 }
 0x4d2   : > { %5204 = vpow2.f32 %v1861_v55 }
 0x4d3   : > { %v5201_v56 = vpop.eup %5200 }
 0x4d4   : > { %v1854_v57 = vpop.xlane.xlu1 %1853  ;;  %v1867_v58 = vsel %vm1842_vm7, %v5201_v56, 0.0 }
 0x4d5   : > { %v1858_v59 = vsub.f32 %v1836_v42, %v1854_v57  ;;  %1868 = vadd.xlane.f32.xlu0 %v1867_v58 }
 0x4d7   : > { %v1865_v60 = vmul.f32 1.442695, %v1858_v59 }
 0x4d9   : > { %5206 = vpow2.f32 %v1865_v60 }
 0x4db   : > { %v5203_v61 = vpop.eup %5202 }
 0x4dc   : > { %v5205_v62 = vpop.eup %5204  ;;  %v1873_v0 = vsel %vm1842_vm7, %v5203_v61, 0.0 }
 0x4dd   : > { %1874 = vadd.xlane.f32.xlu0 %v1873_v0  ;;  %v1870_v1 = vsel %vm1842_vm7, %v5205_v62, 0.0 }
 0x4de   : > { %1871 = vadd.xlane.f32.xlu1 %v1870_v1 }
 0x4e3   : > { %v5207_v2 = vpop.eup %5206 }
 0x4e4   : > { %v1876_v3 = vsel %vm1842_vm7, %v5207_v2, 0.0 }
 0x4e5   : > { %1877 = vadd.xlane.f32.xlu1 %v1876_v3 }
 0x562   : > { %v1869_v4 = vpop.xlane.xlu0 %1868 }
 0x563   : > { %5208 = vrcp.f32 %v1869_v4 }
 0x56a   : > { %v1875_v7 = vpop.xlane.xlu0 %1874 }
 0x56b   : > { %5210 = vrcp.f32 %v1875_v7  ;;  %v1872_v8 = vpop.xlane.xlu1 %1871 }
 0x56c   : > { %5212 = vrcp.f32 %v1872_v8 }
 0x56d   : > { %v5209_v9 = vpop.eup %5208 }
 0x56e   : > { %v1883_v11 = vmul.f32 %v5209_v9, %v5201_v56 }
 0x570   : > { %v1887_v13 = vpack.c.bf16 %v1883_v11, %v1883_v11 }
 0x572   : > { %4818 = vmatmul.mubr.msk.bf16.vlgmr.msra.gmra.mrb[24].mxu0 %vm1895_vm8, %v1887_v13  ;;  %v1878_v16 = vpop.xlane.xlu1 %1877 }
 0x573   : > { %4828 = vmatpush3.bf16.msra.mxu0 %v1996_v14  ;;  %5214 = vrcp.f32 %v1878_v16  ;;  %4829 = vmatprep.mubr.msk.bf16.mxu0 %vm5316_vm2, %v5315_v30 }
 0x574   : > { %4839 = vmatprep.subr.bf16.mxu0 %v5315_v30 }
 0x575   : > { %v5211_v17 = vpop.eup %5210 }
 0x576   : > { %v5213_v19 = vpop.eup %5212  ;;  %v1885_v21 = vmul.f32 %v5211_v17, %v5203_v61 }
 0x577   : > { %v1884_v23 = vmul.f32 %v5213_v19, %v5205_v62  ;;  %v4378_v19 = vld [vmem:[%s6293_s12] ss:$0 sm:$0xff] }
 0x578   : > { %v1889_v24 = vpack.c.bf16 %v1885_v21, %v1885_v21 }
 0x579   : > { %v1888_v25 = vpack.c.bf16 %v1884_v23, %v1884_v23 }
 0x57a   : > { %4830 = vmatmul.mubr.msk.bf16.vlgmr.msra.gmra.mrb[28].mxu0 %vm1895_vm8, %v1889_v24 }
 0x57b   : > { %4824 = vmatmul.mubr.msk.bf16.vlgmr.msra.gmra.mrb[44].mxu1 %vm1895_vm8, %v1888_v25  ;;  %4841 = vmatprep.mubr.msk.bf16.mxu0 %vm5316_vm2, %v5315_v30 }
 0x57c   : > { %4834 = vmatpush3.bf16.msra.mxu1 %v2042_v26  ;;  %4835 = vmatprep.mubr.msk.bf16.mxu1 %vm5316_vm2, %v5315_v30 }
 0x57d   : > { %v5215_v22 = vpop.eup %5214  ;;  %4845 = vmatprep.subr.bf16.mxu1 %v5315_v30  ;;  %4840 = vmatpush3.bf16.msra.mxu0 %v2097_v31 }
 0x57e   : > { %v1886_v27 = vmul.f32 %v5215_v22, %v5207_v2  ;;  %4851 = vmatprep.subr.bf16.mxu0 %v5315_v30 }
 0x580   : > { %v1890_v28 = vpack.c.bf16 %v1886_v27, %v1886_v27 }
 0x583   : > { %4836 = vmatmul.mubr.msk.bf16.vlgmr.msra.gmra.mrb[48].mxu1 %vm1895_vm8, %v1890_v28  ;;  %v5160_v28 = vld [vmem:[%s6296_s15] sm:$0xff]  }
 0x584   : > { %4847 = vmatprep.mubr.msk.bf16.mxu1 %vm5316_vm2, %v5315_v30  ;;  %4846 = vmatpush3.bf16.msra.mxu1 %v2143_v33 }
 0x585   : > { %4857 = vmatprep.subr.bf16.mxu1 %v5315_v30 }
 0x645   : > { %v1940_v35 = vpop.f32.mrb[24].mxu0 }
 0x646   : > { %v2084_v36 = vpack.c.bf16 %v1940_v35, %v1940_v35  ;;  %v4819_v37 = vpop.f32.mrb[25].mxu0 }
 0x647   : > { %v1943_v39 = vpop.f32.mrb[26].mxu0 }
 0x648   : > { %v4820_v40 = vpop.f32.mrb[27].mxu0  ;;  %4842 = vmatmul.mubr.msk.bf16.vlgmr.msra.gmra.mrb[32].mxu0 %vm1657_vm4, %v2084_v36  ;;  %v4380_v36 = vld [vmem:[%s6295_s14] ss:$0 sm:$0xff] }
 0x649   : > { %4852 = vmatpush3.bf16.msra.mxu0 %v2189_v38  ;;  %4853 = vmatprep.mubr.msk.bf16.mxu0 %vm5316_vm2, %v5315_v30  ;;  %v5162_v40 = vld [vmem:[%s6298_s17] sm:$0xff]  }
 0x64a   : > { %4863 = vmatprep.subr.bf16.mxu0 %v5315_v30 }
 0x64d   : > { %v2032_v42 = vpop.f32.mrb[28].mxu0 }
 0x64e   : > { %v1986_v43 = vpop.f32.mrb[44].mxu1  ;;  %v2086_v44 = vpack.c.bf16 %v2032_v42, %v2032_v42  ;;  %v4831_v45 = vpop.f32.mrb[29].mxu0  ;;  %v5164_v42 = vld [vmem:[%s6298_s17 + $0x10] sm:$0xff]  }
 0x64f   : > { %v2085_v46 = vpack.c.bf16 %v1986_v43, %v1986_v43  ;;  %v4825_v47 = vpop.f32.mrb[45].mxu1  ;;  %v2035_v48 = vpop.f32.mrb[30].mxu0  ;;  %v5165_v43 = vld [vmem:[%s6298_s17 + $0x18] sm:$0xff]  }
 0x650   : > { %v1989_v50 = vpop.f32.mrb[46].mxu1  ;;  %v4832_v51 = vpop.f32.mrb[31].mxu0  ;;  %4854 = vmatmul.mubr.msk.bf16.vlgmr.msra.gmra.mrb[36].mxu0 %vm1657_vm4, %v2086_v44  ;;  %v4381_v44 = vld [vmem:[%s6297_s16] ss:$0 sm:$0xff] }
 0x651   : > { %v4826_v52 = vpop.f32.mrb[47].mxu1  ;;  %4848 = vmatmul.mubr.msk.bf16.vlgmr.msra.gmra.mrb[52].mxu1 %vm1657_vm4, %v2085_v46  ;;  %4867 = vmatprep.mubr.msk.bf16.mxu0 %vm5316_vm2, %v5315_v30 }
 0x652   : > { %4858 = vmatpush3.bf16.msra.mxu1 %v2235_v49  ;;  %4859 = vmatprep.mubr.msk.bf16.mxu1 %vm5316_vm2, %v5315_v30 }
 0x653   : > { %4871 = vmatprep.subr.bf16.mxu1 %v5315_v30  ;;  %4864 = vmatpush3.bf16.msra.mxu0 %v5160_v28  ;;  %v5166_v28 = vld [vmem:[%s6342_s6 + $0x40] sm:$0xff]  }
 0x654   : > { %4865 = vmatprep.subr.bf16.mxu0 %v5315_v30 }
 0x656   : > { %v2078_v53 = vpop.f32.mrb[48].mxu1 }
 0x657   : > { %v2087_v54 = vpack.c.bf16 %v2078_v53, %v2078_v53  ;;  %v4837_v55 = vpop.f32.mrb[49].mxu1 }
 0x658   : > { %v2081_v56 = vpop.f32.mrb[50].mxu1 }
 0x659   : > { %v4838_v57 = vpop.f32.mrb[51].mxu1  ;;  %4860 = vmatmul.mubr.msk.bf16.vlgmr.msra.gmra.mrb[56].mxu1 %vm1657_vm4, %v2087_v54 }
 0x65a   : > { %4879 = vmatprep.mubr.msk.bf16.mxu1 %vm5316_vm2, %v5315_v30  ;;  %4872 = vmatpush3.bf16.msra.mxu1 %v5162_v40  ;;  %v5170_v40 = vld [vmem:[%s6342_s6 + $0x50] sm:$0xff]  }
 0x65b   : > { %4873 = vmatprep.subr.bf16.mxu1 %v5315_v30 }
 0x65e   : > { %4874 = vmatpush3.bf16.msra.mxu1 %v5163_v41  ;;  %v5171_v41 = vld [vmem:[%s6343_s1 + $0x40] sm:$0xff]  }
 0x65f   : > { %4875 = vmatprep.subr.bf16.mxu1 %v5315_v30 }
 0x662   : > { %4876 = vmatpush3.bf16.msra.mxu1 %v5164_v42 }
 0x663   : > { %4877 = vmatprep.subr.bf16.mxu1 %v5315_v30 }
 0x666   : > { %4878 = vmatpush3.bf16.msra.mxu1 %v5165_v43  ;;  %v5172_v43 = vld [vmem:[%s6342_s6 + $0x58] sm:$0xff]  }
 0x667   : > { %4899 = vmatprep.subr.bf16.mxu1 %v5315_v30 }
 0x71b   : > { %v2133_v58 = vpop.f32.mrb[32].mxu0 }
 0x71c   : > { %v4843_v59 = vpop.f32.mrb[33].mxu0  ;;  %v2277_v2 = vsel %vm859_vm1, %v2133_v58, 0.0 }
 0x71d   : > { %v2136_v60 = vpop.f32.mrb[34].mxu0 }
 0x71e   : > { %v4844_v61 = vpop.f32.mrb[35].mxu0 }
 0x723   : > { %v2225_v62 = vpop.f32.mrb[36].mxu0 }
 0x724   : > { %v2179_v0 = vpop.f32.mrb[52].mxu1  ;;  %v4855_v1 = vpop.f32.mrb[37].mxu0  ;;  %v2280_v9 = vsel %vm859_vm1, %v2225_v62, 0.0 }
 0x725   : > { %v2278_v3 = vsel %vm859_vm1, %v2179_v0, 0.0  ;;  %v4849_v4 = vpop.f32.mrb[53].mxu1  ;;  %v2228_v5 = vpop.f32.mrb[38].mxu0 }
 0x726   : > { %v2279_v6 = vadd.f32 %v2278_v3, %v2277_v2  ;;  %v2182_v7 = vpop.f32.mrb[54].mxu1  ;;  %v4856_v8 = vpop.f32.mrb[39].mxu0 }
 0x727   : > { %v4850_v10 = vpop.f32.mrb[55].mxu1 }
 0x728   : > { %v2281_v11 = vadd.f32 %v2280_v9, %v2279_v6 }
 0x72c   : > { %v2271_v12 = vpop.f32.mrb[56].mxu1 }
 0x72d   : > { %v2282_v13 = vsel %vm859_vm1, %v2271_v12, 0.0  ;;  %v4861_v14 = vpop.f32.mrb[57].mxu1 }
 0x72e   : > { %v2283_v15 = vadd.f32 %v2282_v13, %v2281_v11  ;;  %v2274_v16 = vpop.f32.mrb[58].mxu1  ;;  %v4385_v13 = vld [vmem:[%s6299_s18] ss:$0 sm:$0xff] }
 0x72f   : > { %v4862_v17 = vpop.f32.mrb[59].mxu1 }
 0x730   : > { %v2284_v20 = vadd.f32 %v2283_v15, %v5532_v18  ;;  %v5161_v18 = vld [vmem:[%s6296_s15 + $0x8] sm:$0xff]  }
 0x731   : > { %4866 = vmatpush3.bf16.msra.mxu0 %v5161_v18  ;;  %v5168_v18 = vld [vmem:[%s6342_s6 + $0x48] sm:$0xff]  }
 0x732   : > { %v5831_v21 = vadd.f32 %v4378_v19, %v2284_v20  ;;  %4883 = vmatprep.subr.bf16.mxu0 %v5315_v30 }
 0x734   : > { %v2295_v23 = vsel %vm859_vm1, %v5831_v21, 0.0 }
 0x735   : > { %2296 = vadd.xlane.f32.xlu0 %v2295_v23 }
 0x7c2   : > { %v2297_v24 = vpop.xlane.xlu0 %2296 }
 0x7c3   : > { %v2298_v25 = vmul.f32 0.03125, %v2297_v24 }
 0x7c5   : > { %v2299_v26 = vsub.f32 %v5831_v21, %v2298_v25 }
 0x7c7   : > { %v2300_v22 = vmul.f32 %v2299_v26, %v2299_v26 }
 0x7c9   : > { %v2301_v27 = vsel %vm859_vm1, %v2300_v22, 0.0 }
 0x7ca   : > { %2302 = vadd.xlane.f32.xlu1 %v2301_v27 }
 0x857   : > { %v2303_v29 = vpop.xlane.xlu1 %2302 }
 0x858   : > { %v2304_v31 = vmul.f32 0.03125, %v2303_v29  ;;  %v5169_v29 = vld [vmem:[%s6342_s6 + $0x68] sm:$0xff]  }
 0x85a   : > { %v2305_v32 = vadd.f32 1e-12, %v2304_v31 }
 0x85c   : > { %5216 = vrsqrt.f32 %v2305_v32 }
 0x866   : > { %v5217_v33 = vpop.eup %5216 }
 0x867   : > { %v2307_v35 = vmul.f32 %v5217_v33, %v2299_v26 }
 0x869   : > { %v2314_v37 = vmul.f32 %v4379_v34, %v2307_v35  ;;  %v4393_v35 = vld [vmem:[%s6345_s28 + $0x1] ss:$0 sm:$0xff] }
 0x86b   : > { %v2321_v38 = vadd.f32 %v4380_v36, %v2314_v37  ;;  %v4394_v37 = vld [vmem:[%s6346_s2 + $0x1] ss:$0 sm:$0xff] }
 0x86d   : > { %v2322_v39 = vpack.c.bf16 %v2321_v38, %v2321_v38 }
 0x86f   : > { %4868 = vmatmul.mubr.msk.bf16.vlgmr.msra.gmra.mrb[40].mxu0 %vm945_vm3, %v2322_v39 }
 0x870   : > { %4887 = vmatprep.mubr.msk.bf16.mxu0 %vm5316_vm2, %v5315_v30  ;;  %4884 = vmatpush3.bf16.msra.mxu0 %v5166_v28 }
 0x871   : > { %4885 = vmatprep.subr.bf16.mxu0 %v5315_v30 }
 0x874   : > { %4886 = vmatpush3.bf16.msra.mxu0 %v5168_v18 }
 0x875   : > { %4891 = vmatprep.subr.bf16.mxu0 %v5315_v30 }
 0x942   : > { %v2383_v45 = vpop.f32.mrb[40].mxu0 }
 0x943   : > { %v2384_v46 = vadd.f32 %v4381_v44, %v2383_v45  ;;  %v4869_v47 = vpop.f32.mrb[41].mxu0  ;;  %v5173_v44 = vld [vmem:[%s6343_s1 + $0x48] sm:$0xff]   ;;  %v5174_v45 = vld [vmem:[%s6342_s6 + $0x70] sm:$0xff]  }
 0x944   : > { %v2386_v48 = vpop.f32.mrb[42].mxu0  ;;  %v5176_v47 = vld [vmem:[%s6342_s6 + $0x78] sm:$0xff]  }
 0x945   : > { %v2390_v49 = vmul.f32 0.70710677, %v2384_v46  ;;  %v4870_v50 = vpop.f32.mrb[43].mxu0  ;;  %v2389_v9 = vmul.f32 0.5, %v2384_v46  ;;  %v5175_v46 = vld [vmem:[%s6343_s1 + $0x60] sm:$0xff]   ;;  %v5177_v48 = vld [vmem:[%s6343_s1 + $0x68] sm:$0xff]  }
 0x946   : > { %v5179_v50 = vld [vmem:[%s6290_s9 + $0x40] sm:$0xff]  }
 0x947   : > { %v2391_v51 = vand.u32 2147483647, %v2390_v49  ;;  %vm2410_vm10 = vcmp.ge.f32.partialorder %v2390_v49, 0.0  ;;  %v5178_v49 = vld [vmem:[%s6343_s1 + $0x50] sm:$0xff]  }
 0x949   : > { %v2392_v52 = vmul.f32 0.3275911, %v2391_v51  ;;  %v2404_v54 = vsub.f32 0.0, %v2391_v51 }
 0x94b   : > { %v2393_v53 = vadd.f32 1.0, %v2392_v52  ;;  %v2405_v56 = vmul.f32 %v2404_v54, %v2391_v51  ;;  %v5180_v51 = vld [vmem:[%s6343_s1 + $0x58] sm:$0xff]   ;;  %v5181_v52 = vld [vmem:[%s6290_s9 + $0x48] sm:$0xff]   ;;  %v5183_v54 = vld [vmem:[%s6290_s9 + $0x60] sm:$0xff]  }
 0x94d   : > { %5218 = vrcp.f32 %v2393_v53  ;;  %v2406_v59 = vmul.f32 1.442695, %v2405_v56  ;;  %v5182_v53 = vld [vmem:[%s6343_s1 + $0x70] sm:$0xff]   ;;  %v5185_v56 = vld [vmem:[%s6290_s9 + $0x68] sm:$0xff]  }
 0x94f   : > { %5220 = vpow2.f32 %v2406_v59  ;;  %v5188_v59 = vld [vmem:[%s6290_s9 + $0x70] sm:$0xff]  }
 0x957   : > { %v5219_v55 = vpop.eup %5218 }
 0x958   : > { %v2395_v57 = vmul.f32 1.0614054, %v5219_v55 }
 0x959   : > { %v5221_v4 = vpop.eup %5220 }
 0x95a   : > { %v2396_v58 = vadd.f32 -1.4531521, %v2395_v57  ;;  %v5186_v57 = vld [vmem:[%s6290_s9 + $0x50] sm:$0xff]  }
 0x95c   : > { %v2397_v60 = vmul.f32 %v5219_v55, %v2396_v58  ;;  %v5187_v58 = vld [vmem:[%s6290_s9 + $0x58] sm:$0xff]  }
 0x95e   : > { %v2398_v61 = vadd.f32 1.4214138, %v2397_v60  ;;  %v5189_v60 = vld [vmem:[%s6290_s9 + $0x78] sm:$0xff]  }
 0x960   : > { %v2399_v62 = vmul.f32 %v5219_v55, %v2398_v61 }
 0x962   : > { %v2400_v0 = vadd.f32 -0.28449672, %v2399_v62 }
 0x964   : > { %v2401_v1 = vmul.f32 %v5219_v55, %v2400_v0 }
 0x966   : > { %v2402_v2 = vadd.f32 0.2548296, %v2401_v1 }
 0x968   : > { %v2403_v3 = vmul.f32 %v5219_v55, %v2402_v2  ;;  %v5184_v55 = vld [vmem:[%s6343_s1 + $0x78] sm:$0xff]   ;;  %s6349_s1 = sld [smem:[#allocation19_spill]] }
 0x96a   : > { %v2408_v5 = vmul.f32 %v5221_v4, %v2403_v3 }
 0x96c   : > { %v2409_v6 = vsub.f32 1.0, %v2408_v5 }
 0x96e   : > { %v2411_v7 = vsub.f32 0.0, %v2409_v6  ;;  %s6238_s2 = scalar_lea.hbm %s6349_s1, %s4552_s0 }
 0x970   : > { %v2412_v8 = vsel %vm2410_vm10, %v2409_v6, %v2411_v7  ;;  %v4451_v6 = vld [vmem:[%s6289_s8 + $0x4] ss:$0 sm:$0xff] }
 0x971   : > { %v2413_v10 = vadd.f32 1.0, %v2412_v8 }
 0x973   : > { %v2414_v11 = vmul.f32 %v2413_v10, %v2389_v9 }
 0x975   : > { %v2415_v12 = vpack.c.bf16 %v2414_v11, %v2414_v11 }
 0x977   : > { %4880 = vmatmul.mubr.msk.bf16.vlgmr.msra.gmra.mrb[60].mxu1 %vm813_vm0, %v2415_v12 }
 0x978   : > { %4903 = vmatprep.mubr.msk.bf16.mxu1 %vm5316_vm2, %v5315_v30 }
 0xa4a   : > { %v2492_v14 = vpop.f32.mrb[60].mxu1 }
 0xa4b   : > { %v2493_v15 = vadd.f32 %v4385_v13, %v2492_v14  ;;  %v4881_v16 = vpop.f32.mrb[61].mxu1 }
 0xa4c   : > { %v2495_v17 = vpop.f32.mrb[62].mxu1 }
 0xa4d   : > { %v5880_v19 = vadd.f32 %v2493_v15, %v5831_v21  ;;  %v4882_v20 = vpop.f32.mrb[63].mxu1  ;;  %v5167_v21 = vld [vmem:[%s6342_s6 + $0x60] sm:$0xff]   ;;  %s5254_s6 = sshll.u32 %s5318_s5, 4  ;;  %s5255_s6 = int_to_ptr.vmem [resolvable:$false] %s5254_s6 }
 0xa4e   : > { %4900 = vmatpush3.bf16.msra.mxu1 %v5167_v21  ;;  %v4415_v17 = vld [vmem:[%s6348_s27 + $0x4] ss:$0 sm:$0xff]  ;;  %s5256_s23 = scalar_lea.vmem %s5255_s6, 32  ;;  %p5257_p0 = scmp.lt.s32.totalorder %s6240_s24, %s5255_s6 }
 0xa4f   : > { %v2503_v23 = vsel %vm859_vm1, %v5880_v19, 0.0  ;;  %4901 = vmatprep.subr.bf16.mxu1 %v5315_v30  ;;  %p5258_p1 = scmp.lt.s32.totalorder %s5256_s23, %s5250_s4 }
 0xa50   : > { %2504 = vadd.xlane.f32.xlu0 %v2503_v23  ;;  %v4453_v23 = vld [vmem:[%s6289_s8 + $0x6] ss:$0 sm:$0xff] }
 0xa51   : > { %p5259_p2 = por %p5258_p1, %p5257_p0 }
 0xa52   : > { %4902 = vmatpush3.bf16.msra.mxu1 %v5169_v29 }
 0xa53   : > { %4915 = vmatprep.subr.bf16.mxu1 %v5315_v30  ;;  %p5260_p3 = pnand %p5259_p2, %p5253_p13 }
 0xadd   : > { %v2505_v24 = vpop.xlane.xlu0 %2504 }
 0xade   : > { %v2506_v25 = vmul.f32 0.03125, %v2505_v24 }
 0xae0   : > { %v2507_v26 = vsub.f32 %v5880_v19, %v2506_v25 }
 0xae2   : > { %v2508_v22 = vmul.f32 %v2507_v26, %v2507_v26 }
 0xae4   : > { %v2509_v27 = vsel %vm859_vm1, %v2508_v22, 0.0 }
 0xae5   : > { %2510 = vadd.xlane.f32.xlu1 %v2509_v27 }
 0xb72   : > { %v2511_v31 = vpop.xlane.xlu1 %2510 }
 0xb73   : > { %v2512_v32 = vmul.f32 0.03125, %v2511_v31 }
 0xb75   : > { %v2513_v33 = vadd.f32 1e-12, %v2512_v32 }
 0xb77   : > { %5222 = vrsqrt.f32 %v2513_v33 }
 0xb81   : > { %v5223_v34 = vpop.eup %5222 }
 0xb82   : > { %v2515_v36 = vmul.f32 %v5223_v34, %v2507_v26  ;;  %v4417_v34 = vld [vmem:[%s6348_s27 + $0x6] ss:$0 sm:$0xff] }
 0xb84   : > { %v2522_v38 = vmul.f32 %v4393_v35, %v2515_v36  ;;  %v4452_v36 = vld [vmem:[%s6289_s8 + $0x5] ss:$0 sm:$0xff] }
 0xb86   : > { %v2529_v39 = vadd.f32 %v4394_v37, %v2522_v38  ;;  %v4487_v37 = vld [vmem:[%s6291_s10 + $0x4] ss:$0 sm:$0xff] }
 0xb88   : > { %v5914_v42 = vpack.c.bf16 %v2529_v39, %v2529_v39 }
 0xb8a   : > { %4888 = vmatmul.mubr.msk.bf16.vlgmr.msra.gmra.mrb[44].mxu0 %vm945_vm3, %v5914_v42  ;;  %4904 = vmatmul.mubr.msk.bf16.vlgmr.msra.gmra.mrb[64].mxu1 %vm945_vm3, %v5914_v42 }
 0xb8b   : > { %4892 = vmatpush3.bf16.msra.mxu0 %v5170_v40  ;;  %4916 = vmatpush3.bf16.msra.mxu1 %v5171_v41 }
 0xb8c   : > { %4893 = vmatprep.subr.bf16.mxu0 %v5315_v30  ;;  %4917 = vmatprep.subr.bf16.mxu1 %v5315_v30 }
 0xb8d   : > { %4895 = vmatprep.mubr.msk.bf16.mxu0 %vm5316_vm2, %v5315_v30  ;;  %4919 = vmatprep.mubr.msk.bf16.mxu1 %vm5316_vm2, %v5315_v30 }
 0xb8f   : > { %4894 = vmatpush3.bf16.msra.mxu0 %v5172_v43  ;;  %4918 = vmatpush3.bf16.msra.mxu1 %v5173_v44 }
 0xb90   : > { %4907 = vmatprep.subr.bf16.mxu0 %v5315_v30  ;;  %4931 = vmatprep.subr.bf16.mxu1 %v5315_v30 }
 0xb92   : > { %4896 = vmatmul.mubr.msk.bf16.vlgmr.msra.gmra.mrb[48].mxu0 %vm945_vm3, %v5914_v42  ;;  %4920 = vmatmul.mubr.msk.bf16.vlgmr.msra.gmra.mrb[68].mxu1 %vm945_vm3, %v5914_v42 }
 0xb93   : > { %4908 = vmatpush3.bf16.msra.mxu0 %v5174_v45  ;;  %4932 = vmatpush3.bf16.msra.mxu1 %v5175_v46 }
 0xb94   : > { %4909 = vmatprep.subr.bf16.mxu0 %v5315_v30  ;;  %4933 = vmatprep.subr.bf16.mxu1 %v5315_v30 }
 0xb95   : > { %4911 = vmatprep.mubr.msk.bf16.mxu0 %vm5316_vm2, %v5315_v30  ;;  %4935 = vmatprep.mubr.msk.bf16.mxu1 %vm5316_vm2, %v5315_v30 }
 0xb97   : > { %4910 = vmatpush3.bf16.msra.mxu0 %v5176_v47  ;;  %4934 = vmatpush3.bf16.msra.mxu1 %v5177_v48 }
 0xb98   : > { %4923 = vmatprep.subr.bf16.mxu0 %v5315_v30  ;;  %4947 = vmatprep.subr.bf16.mxu1 %v5315_v30 }
 0xb9a   : > { %4912 = vmatmul.mubr.msk.bf16.vlgmr.msra.gmra.mrb[52].mxu0 %vm945_vm3, %v5914_v42  ;;  %4936 = vmatmul.mubr.msk.bf16.vlgmr.msra.gmra.mrb[72].mxu1 %vm945_vm3, %v5914_v42 }
 0xb9b   : > { %4924 = vmatpush3.bf16.msra.mxu0 %v5178_v49  ;;  %4948 = vmatpush3.bf16.msra.mxu1 %v5179_v50 }
 0xb9c   : > { %4925 = vmatprep.subr.bf16.mxu0 %v5315_v30  ;;  %4949 = vmatprep.subr.bf16.mxu1 %v5315_v30 }
 0xb9d   : > { %4927 = vmatprep.mubr.msk.bf16.mxu0 %vm5316_vm2, %v5315_v30  ;;  %4951 = vmatprep.mubr.msk.bf16.mxu1 %vm5316_vm2, %v5315_v30 }
 0xb9f   : > { %4926 = vmatpush3.bf16.msra.mxu0 %v5180_v51  ;;  %4950 = vmatpush3.bf16.msra.mxu1 %v5181_v52  ;;  %v4416_v52 = vld [vmem:[%s6348_s27 + $0x5] ss:$0 sm:$0xff] }
 0xba0   : > { %4939 = vmatprep.subr.bf16.mxu0 %v5315_v30  ;;  %4963 = vmatprep.subr.bf16.mxu1 %v5315_v30 }
 0xba2   : > { %4928 = vmatmul.mubr.msk.bf16.vlgmr.msra.gmra.mrb[56].mxu0 %vm945_vm3, %v5914_v42  ;;  %4952 = vmatmul.mubr.msk.bf16.vlgmr.msra.gmra.mrb[76].mxu1 %vm945_vm3, %v5914_v42 }
 0xba3   : > { %4940 = vmatpush3.bf16.msra.mxu0 %v5182_v53  ;;  %4964 = vmatpush3.bf16.msra.mxu1 %v5183_v54 }
 0xba4   : > { %4941 = vmatprep.subr.bf16.mxu0 %v5315_v30  ;;  %4965 = vmatprep.subr.bf16.mxu1 %v5315_v30 }
 0xba5   : > { %4943 = vmatprep.mubr.msk.bf16.mxu0 %vm5316_vm2, %v5315_v30  ;;  %4967 = vmatprep.mubr.msk.bf16.mxu1 %vm5316_vm2, %v5315_v30 }
 0xba7   : > { %4942 = vmatpush3.bf16.msra.mxu0 %v5184_v55  ;;  %4966 = vmatpush3.bf16.msra.mxu1 %v5185_v56  ;;  %v4454_v55 = vld [vmem:[%s6289_s8 + $0x7] ss:$0 sm:$0xff] }
 0xba8   : > { %4955 = vmatprep.subr.bf16.mxu0 %v5315_v30  ;;  %4979 = vmatprep.subr.bf16.mxu1 %v5315_v30 }
 0xbaa   : > { %4944 = vmatmul.mubr.msk.bf16.vlgmr.msra.gmra.mrb[60].mxu0 %vm945_vm3, %v5914_v42  ;;  %4968 = vmatmul.mubr.msk.bf16.vlgmr.msra.gmra.mrb[80].mxu1 %vm945_vm3, %v5914_v42 }
 0xbab   : > { %4956 = vmatpush3.bf16.msra.mxu0 %v5186_v57  ;;  %4959 = vmatprep.mubr.msk.bf16.mxu0 %vm5316_vm2, %v5315_v30 }
 0xbac   : > { %4957 = vmatprep.subr.bf16.mxu0 %v5315_v30  ;;  %4981 = vmatprep.mubr.msk.bf16.mxu1 %vm5316_vm2, %v5315_v30 }
 0xbaf   : > { %4958 = vmatpush3.bf16.msra.mxu0 %v5187_v58 }
 0xbb0   : > { %4971 = vmatprep.subr.bf16.mxu0 %v5315_v30 }
 0xbb2   : > { %4960 = vmatmul.mubr.msk.bf16.vlgmr.msra.gmra.mrb[64].mxu0 %vm945_vm3, %v5914_v42 }
 0xbb3   : > { %4972 = vmatpush3.bf16.msra.mxu0 %v5188_v59  ;;  %4975 = vmatprep.mubr.msk.bf16.mxu0 %vm5316_vm2, %v5315_v30 }
 0xbb4   : > { %4973 = vmatprep.subr.bf16.mxu0 %v5315_v30 }
 0xbb7   : > { %4974 = vmatpush3.bf16.msra.mxu0 %v5189_v60 }
 0xbb8   : > { %4985 = vmatprep.subr.bf16.mxu0 %v5315_v30 }
 0xbba   : > { %4976 = vmatmul.mubr.msk.bf16.vlgmr.msra.gmra.mrb[68].mxu0 %vm945_vm3, %v5914_v42 }
 0xbbb   : > { %4987 = vmatprep.mubr.msk.bf16.mxu0 %vm5316_vm2, %v5315_v30 }
 0xc5d   : > { %v2626_v61 = vpop.f32.mrb[44].mxu0  ;;  %v2730_v62 = vpop.f32.mrb[64].mxu1 }
 0xc5e   : > { %v4889_v0 = vpop.f32.mrb[45].mxu0  ;;  %v4905_v1 = vpop.f32.mrb[65].mxu1  ;;  %v2627_v24 = vadd.f32 %v4415_v17, %v2626_v61  ;;  %v2731_v38 = vadd.f32 %v4417_v34, %v2730_v62 }
 0xc5f   : > { %v2629_v2 = vpop.f32.mrb[46].mxu0  ;;  %v2733_v3 = vpop.f32.mrb[66].mxu1 }
 0xc60   : > { %v4890_v4 = vpop.f32.mrb[47].mxu0  ;;  %v4906_v5 = vpop.f32.mrb[67].mxu1  ;;  %v3296_v29 = vpack.c.bf16 %v2627_v24, %v2627_v24  ;;  %v3298_v47 = vpack.c.bf16 %v2731_v38, %v2731_v38 }
 0xc61   : > { %v4418_v5 = vld [vmem:[%s6348_s27 + $0x7] ss:$0 sm:$0xff] }
 0xc65   : > { %v2678_v7 = vpop.f32.mrb[48].mxu0  ;;  %v2880_v8 = vpop.f32.mrb[68].mxu1 }
 0xc66   : > { %v2881_v9 = vadd.f32 %v4451_v6, %v2880_v8  ;;  %v4897_v10 = vpop.f32.mrb[49].mxu0  ;;  %v4921_v11 = vpop.f32.mrb[69].mxu1  ;;  %v2679_v56 = vadd.f32 %v4416_v52, %v2678_v7  ;;  %v4488_v7 = vld [vmem:[%s6291_s10 + $0x5] ss:$0 sm:$0xff] }
 0xc67   : > { %v2681_v12 = vpop.f32.mrb[50].mxu0  ;;  %v2883_v13 = vpop.f32.mrb[70].mxu1 }
 0xc68   : > { %v3300_v14 = vpack.c.bf16 %v2881_v9, %v2881_v9  ;;  %v4898_v15 = vpop.f32.mrb[51].mxu0  ;;  %v4922_v16 = vpop.f32.mrb[71].mxu1  ;;  %v3297_v1 = vpack.c.bf16 %v2679_v56, %v2679_v56 }
 0xc6a   : > { %v3308_v20 = vsel %vm1657_vm4, %v3300_v14, 0 }
 0xc6b   : > { %4980 = vmatpush3.bf16.xpose.msra.mxu1 %v3308_v20 }
 0xc6c   : > { %4991 = vmatprep.subr.bf16.mxu1 %v5315_v30 }
 0xc6d   : > { %v2782_v25 = vpop.f32.mrb[52].mxu0  ;;  %v2984_v26 = vpop.f32.mrb[72].mxu1 }
 0xc6e   : > { %v2985_v22 = vadd.f32 %v4453_v23, %v2984_v26  ;;  %v4913_v27 = vpop.f32.mrb[53].mxu0  ;;  %v4937_v28 = vpop.f32.mrb[73].mxu1  ;;  %v2783_v8 = vadd.f32 %v4418_v5, %v2782_v25 }
 0xc6f   : > { %v2785_v21 = vpop.f32.mrb[54].mxu0  ;;  %v2987_v18 = vpop.f32.mrb[74].mxu1 }
 0xc70   : > { %v3302_v31 = vpack.c.bf16 %v2985_v22, %v2985_v22  ;;  %v4914_v32 = vpop.f32.mrb[55].mxu0  ;;  %v4938_v33 = vpop.f32.mrb[75].mxu1  ;;  %v3299_v13 = vpack.c.bf16 %v2783_v8, %v2783_v8 }
 0xc72   : > { %v3400_v35 = vsel %vm1657_vm4, %v3302_v31, 0  ;;  %4982 = vmatmul.mubr.msk.bf16.vlgmr.msra.gmra.mrb[84].mxu1 %vm1657_vm4, %v3296_v29 }
 0xc73   : > { %4992 = vmatpush3.bf16.xpose.msra.mxu1 %v3400_v35  ;;  %4993 = vmatprep.mubr.msk.bf16.mxu1 %vm5316_vm2, %v5315_v30 }
 0xc74   : > { %5003 = vmatprep.subr.bf16.mxu1 %v5315_v30 }
 0xc75   : > { %v2932_v39 = vpop.f32.mrb[56].mxu0  ;;  %v3134_v40 = vpop.f32.mrb[76].mxu1 }
 0xc76   : > { %v2933_v41 = vadd.f32 %v4452_v36, %v2932_v39  ;;  %v3135_v42 = vadd.f32 %v4487_v37, %v3134_v40  ;;  %v4929_v43 = vpop.f32.mrb[57].mxu0  ;;  %v4953_v44 = vpop.f32.mrb[77].mxu1 }
 0xc77   : > { %v2935_v45 = vpop.f32.mrb[58].mxu0  ;;  %v3137_v46 = vpop.f32.mrb[78].mxu1 }
 0xc78   : > { %v3301_v48 = vpack.c.bf16 %v2933_v41, %v2933_v41  ;;  %v3536_v49 = vpack.c.bf16 %v3135_v42, %v3135_v42  ;;  %v4930_v50 = vpop.f32.mrb[59].mxu0  ;;  %v4954_v51 = vpop.f32.mrb[79].mxu1 }
 0xc7a   : > { %v3354_v53 = vsel %vm1657_vm4, %v3301_v48, 0  ;;  %v3544_v54 = vand.u32 %v3536_v49, %v5733_v63  ;;  %4994 = vmatmul.mubr.msk.bf16.vlgmr.msra.gmra.mrb[88].mxu1 %vm1657_vm4, %v3298_v47 }
 0xc7b   : > { %4986 = vmatpush3.bf16.xpose.msra.mxu0 %v3354_v53  ;;  %5005 = vmatprep.mubr.msk.bf16.mxu1 %vm5316_vm2, %v5315_v30 }
 0xc7c   : > { %5004 = vmatpush3.bf16.msra.mxu1 %v3544_v54  ;;  %4997 = vmatprep.subr.bf16.mxu0 %v5315_v30 }
 0xc7d   : > { %v3036_v57 = vpop.f32.mrb[60].mxu0  ;;  %v6075_v58 = vpop.f32.mrb[80].mxu1  ;;  %5015 = vmatprep.subr.bf16.mxu1 %v5315_v30 }
 0xc7e   : > { %v3037_v59 = vadd.f32 %v4454_v55, %v3036_v57  ;;  %v4945_v60 = vpop.f32.mrb[61].mxu0  ;;  %v4969_v61 = vpop.f32.mrb[81].mxu1 }
 0xc7f   : > { %v3039_v62 = vpop.f32.mrb[62].mxu0  ;;  %v3241_v0 = vpop.f32.mrb[82].mxu1 }
 0xc80   : > { %v3303_v2 = vpack.c.bf16 %v3037_v59, %v3037_v59  ;;  %v4946_v3 = vpop.f32.mrb[63].mxu0  ;;  %v4970_v4 = vpop.f32.mrb[83].mxu1 }
 0xc82   : > { %v3446_v6 = vsel %vm1657_vm4, %v3303_v2, 0  ;;  %4988 = vmatmul.mubr.msk.bf16.vlgmr.msra.gmra.mrb[72].mxu0 %vm1657_vm4, %v3297_v1  ;;  %v4489_v2 = vld [vmem:[%s6291_s10 + $0x6] ss:$0 sm:$0xff] }
 0xc83   : > { %4998 = vmatpush3.bf16.xpose.msra.mxu0 %v3446_v6  ;;  %4999 = vmatprep.mubr.msk.bf16.mxu0 %vm5316_vm2, %v5315_v30  ;;  %v3239_v3 = vadd.f32 %v4489_v2, %v6075_v58  ;;  %v4490_v58 = vld [vmem:[%s6291_s10 + $0x7] ss:$0 sm:$0xff] }
 0xc84   : > { %5009 = vmatprep.subr.bf16.mxu0 %v5315_v30 }
 0xc85   : > { %v3186_v9 = vpop.f32.mrb[64].mxu0  ;;  %v3538_v6 = vpack.c.bf16 %v3239_v3, %v3239_v3 }
 0xc86   : > { %v3187_v10 = vadd.f32 %v4488_v7, %v3186_v9  ;;  %v4961_v11 = vpop.f32.mrb[65].mxu0 }
 0xc87   : > { %v3189_v12 = vpop.f32.mrb[66].mxu0  ;;  %v3636_v9 = vand.u32 %v3538_v6, %v5733_v63 }
 0xc88   : > { %v3537_v14 = vpack.c.bf16 %v3187_v10, %v3187_v10  ;;  %v4962_v15 = vpop.f32.mrb[67].mxu0 }
 0xc8a   : > { %v3590_v16 = vand.u32 %v3537_v14, %v5733_v63  ;;  %5000 = vmatmul.mubr.msk.bf16.vlgmr.msra.gmra.mrb[76].mxu0 %vm1657_vm4, %v3299_v13 }
 0xc8b   : > { %5011 = vmatprep.mubr.msk.bf16.mxu0 %vm5316_vm2, %v5315_v30 }
 0xc8c   : > { %5010 = vmatpush3.bf16.msra.mxu0 %v3590_v16 }
 0xc8d   : > { %v6093_v17 = vpop.f32.mrb[68].mxu0  ;;  %5021 = vmatprep.subr.bf16.mxu0 %v5315_v30 }
 0xc8e   : > { %v4977_v20 = vpop.f32.mrb[69].mxu0  ;;  %v3291_v14 = vadd.f32 %v4490_v58, %v6093_v17 }
 0xc8f   : > { %v3293_v23 = vpop.f32.mrb[70].mxu0 }
 0xc90   : > { %v4978_v24 = vpop.f32.mrb[71].mxu0  ;;  %v3539_v20 = vpack.c.bf16 %v3291_v14, %v3291_v14 }
 0xd45   : > { %v3344_v25 = vpop.f32.mrb[84].mxu1 }
 0xd46   : > { %v4983_v26 = vpop.f32.mrb[85].mxu1  ;;  %v3488_v22 = vsel %vm1842_vm7, %v3344_v25, -inf }
 0xd47   : > { %3489 = vmax.xlane.f32.xlu0 %v3488_v22  ;;  %v3347_v27 = vpop.f32.mrb[86].mxu1 }
 0xd48   : > { %v4984_v28 = vpop.f32.mrb[87].mxu1 }
 0xd49   : > { %v4512_v28 = vld [vmem:[%s6292_s11 + $0x14] sm:$0xf] }
 0xd4d   : > { %v3436_v21 = vpop.f32.mrb[88].mxu1 }
 0xd4e   : > { %v4995_v18 = vpop.f32.mrb[89].mxu1  ;;  %v3494_v29 = vsel %vm1842_vm7, %v3436_v21, -inf }
 0xd4f   : > { %3495 = vmax.xlane.f32.xlu0 %v3494_v29  ;;  %v3439_v31 = vpop.f32.mrb[90].mxu1  ;;  %v4513_v18 = vld [vmem:[%s6292_s11 + $0x18] sm:$0xf] }
 0xd50   : > { %v4996_v32 = vpop.f32.mrb[91].mxu1 }
 0xd55   : > { %v3390_v33 = vpop.f32.mrb[72].mxu0 }
 0xd56   : > { %v4989_v34 = vpop.f32.mrb[73].mxu0  ;;  %v3491_v35 = vsel %vm1842_vm7, %v3390_v33, -inf }
 0xd57   : > { %3492 = vmax.xlane.f32.xlu1 %v3491_v35  ;;  %v3393_v36 = vpop.f32.mrb[74].mxu0 }
 0xd58   : > { %v4990_v37 = vpop.f32.mrb[75].mxu0 }
 0xd5d   : > { %v3482_v38 = vpop.f32.mrb[76].mxu0 }
 0xd5e   : > { %v5001_v39 = vpop.f32.mrb[77].mxu0  ;;  %v3497_v40 = vsel %vm1842_vm7, %v3482_v38, -inf }
 0xd5f   : > { %3498 = vmax.xlane.f32.xlu1 %v3497_v40  ;;  %v3485_v41 = vpop.f32.mrb[78].mxu0 }
 0xd60   : > { %v5002_v42 = vpop.f32.mrb[79].mxu0  ;;  %v4514_v41 = vld [vmem:[%s6292_s11 + $0x1c] sm:$0xf] }
 0xdd4   : > { %v3490_v43 = vpop.xlane.xlu0 %3489 }
 0xdd5   : > { %v3500_v44 = vsub.f32 %v3344_v25, %v3490_v43  ;;  %v3682_v25 = vand.u32 %v3539_v20, %v5733_v63  ;;  %v4511_v63 = vld [vmem:[%s6292_s11 + $0x10] sm:$0xf] }
 0xdd6   : > { %v3737_v27 = vsel %vm2095_vm9, %v4511_v63, 0 }
 0xdd7   : > { %v3504_v45 = vmul.f32 1.442695, %v3500_v44 }
 0xdd9   : > { %5224 = vpow2.f32 %v3504_v45  ;;  %v3875_v45 = vsel %vm2095_vm9, %v4514_v41, 0 }
 0xddc   : > { %v3496_v46 = vpop.xlane.xlu0 %3495 }
 0xddd   : > { %v3502_v47 = vsub.f32 %v3436_v21, %v3496_v46  ;;  %v3783_v21 = vsel %vm2095_vm9, %v4512_v28, 0 }
 0xddf   : > { %v3508_v48 = vmul.f32 1.442695, %v3502_v47 }
 0xde1   : > { %5226 = vpow2.f32 %v3508_v48 }
 0xde3   : > { %v5225_v49 = vpop.eup %5224 }
 0xde4   : > { %v3493_v50 = vpop.xlane.xlu1 %3492  ;;  %v3512_v51 = vsel %vm1842_vm7, %v5225_v49, 0.0 }
 0xde5   : > { %v3501_v52 = vsub.f32 %v3390_v33, %v3493_v50  ;;  %3513 = vadd.xlane.f32.xlu0 %v3512_v51  ;;  %v3829_v33 = vsel %vm2095_vm9, %v4513_v18, 0 }
 0xde7   : > { %v3506_v53 = vmul.f32 1.442695, %v3501_v52 }
 0xde9   : > { %5228 = vpow2.f32 %v3506_v53 }
 0xdeb   : > { %v5227_v54 = vpop.eup %5226 }
 0xdec   : > { %v3499_v55 = vpop.xlane.xlu1 %3498  ;;  %v3518_v56 = vsel %vm1842_vm7, %v5227_v54, 0.0 }
 0xded   : > { %v3503_v57 = vsub.f32 %v3482_v38, %v3499_v55  ;;  %3519 = vadd.xlane.f32.xlu0 %v3518_v56 }
 0xdef   : > { %v3510_v59 = vmul.f32 1.442695, %v3503_v57 }
 0xdf1   : > { %5230 = vpow2.f32 %v3510_v59 }
 0xdf3   : > { %v5229_v60 = vpop.eup %5228 }
 0xdf4   : > { %v3515_v61 = vsel %vm1842_vm7, %v5229_v60, 0.0 }
 0xdf5   : > { %3516 = vadd.xlane.f32.xlu1 %v3515_v61 }
 0xdfb   : > { %v5231_v62 = vpop.eup %5230 }
 0xdfc   : > { %v3521_v0 = vsel %vm1842_vm7, %v5231_v62, 0.0 }
 0xdfd   : > { %3522 = vadd.xlane.f32.xlu1 %v3521_v0 }
 0xe72   : > { %v3514_v1 = vpop.xlane.xlu0 %3513 }
 0xe73   : > { %5232 = vrcp.f32 %v3514_v1 }
 0xe7a   : > { %v3520_v4 = vpop.xlane.xlu0 %3519 }
 0xe7b   : > { %5234 = vrcp.f32 %v3520_v4 }
 0xe7d   : > { %v5233_v5 = vpop.eup %5232 }
 0xe7e   : > { %v3528_v7 = vmul.f32 %v5233_v5, %v5225_v49 }
 0xe80   : > { %v3532_v8 = vpack.c.bf16 %v3528_v7, %v3528_v7 }
 0xe82   : > { %v3517_v10 = vpop.xlane.xlu1 %3516  ;;  %5006 = vmatmul.mubr.msk.bf16.vlgmr.msra.gmra.mrb[92].mxu1 %vm1895_vm8, %v3532_v8 }
 0xe83   : > { %5236 = vrcp.f32 %v3517_v10  ;;  %5016 = vmatpush3.bf16.msra.mxu1 %v3636_v9  ;;  %5017 = vmatprep.mubr.msk.bf16.mxu1 %vm5316_vm2, %v5315_v30 }
 0xe84   : > { %5027 = vmatprep.subr.bf16.mxu1 %v5315_v30 }
 0xe85   : > { %v5235_v11 = vpop.eup %5234 }
 0xe86   : > { %v3530_v12 = vmul.f32 %v5235_v11, %v5227_v54 }
 0xe88   : > { %v3534_v13 = vpack.c.bf16 %v3530_v12, %v3530_v12 }
 0xe8a   : > { %v3523_v15 = vpop.xlane.xlu1 %3522  ;;  %5018 = vmatmul.mubr.msk.bf16.vlgmr.msra.gmra.mrb[96].mxu1 %vm1895_vm8, %v3534_v13  ;;  %v4520_v13 = vld [vmem:[%s6293_s12 + $0x1] ss:$0 sm:$0xff] }
 0xe8b   : > { %5238 = vrcp.f32 %v3523_v15  ;;  %5029 = vmatprep.mubr.msk.bf16.mxu1 %vm5316_vm2, %v5315_v30  ;;  %5028 = vmatpush3.bf16.msra.mxu1 %v3737_v27 }
 0xe8c   : > { %5039 = vmatprep.subr.bf16.mxu1 %v5315_v30 }
 0xe8d   : > { %v5237_v16 = vpop.eup %5236 }
 0xe8e   : > { %v3529_v23 = vmul.f32 %v5237_v16, %v5229_v60 }
 0xe90   : > { %v3533_v24 = vpack.c.bf16 %v3529_v23, %v3529_v23 }
 0xe92   : > { %5012 = vmatmul.mubr.msk.bf16.vlgmr.msra.gmra.mrb[80].mxu0 %vm1895_vm8, %v3533_v24 }
 0xe93   : > { %5022 = vmatpush3.bf16.msra.mxu0 %v3682_v25  ;;  %5023 = vmatprep.mubr.msk.bf16.mxu0 %vm5316_vm2, %v5315_v30 }
 0xe94   : > { %5033 = vmatprep.subr.bf16.mxu0 %v5315_v30 }
 0xe95   : > { %v5239_v17 = vpop.eup %5238 }
 0xe96   : > { %v3531_v26 = vmul.f32 %v5239_v17, %v5231_v62 }
 0xe98   : > { %v3535_v22 = vpack.c.bf16 %v3531_v26, %v3531_v26  ;;  %v5190_v26 = vld [vmem:[%s6296_s15 + $0x10] sm:$0xff]  }
 0xe9a   : > { %5024 = vmatmul.mubr.msk.bf16.vlgmr.msra.gmra.mrb[84].mxu0 %vm1895_vm8, %v3535_v22 }
 0xe9b   : > { %5035 = vmatprep.mubr.msk.bf16.mxu0 %vm5316_vm2, %v5315_v30  ;;  %5034 = vmatpush3.bf16.msra.mxu0 %v3783_v21  ;;  %v4523_v21 = vld [vmem:[%s6294_s13 + $0x1] ss:$0 sm:$0xff] }
 0xe9c   : > { %5045 = vmatprep.subr.bf16.mxu0 %v5315_v30 }
 0xf55   : > { %v3580_v29 = vpop.f32.mrb[92].mxu1 }
 0xf56   : > { %v3724_v31 = vpack.c.bf16 %v3580_v29, %v3580_v29  ;;  %v5007_v32 = vpop.f32.mrb[93].mxu1  ;;  %v4524_v29 = vld [vmem:[%s6295_s14 + $0x1] ss:$0 sm:$0xff] }
 0xf57   : > { %v3583_v34 = vpop.f32.mrb[94].mxu1 }
 0xf58   : > { %v5008_v35 = vpop.f32.mrb[95].mxu1  ;;  %5030 = vmatmul.mubr.msk.bf16.vlgmr.msra.gmra.mrb[100].mxu1 %vm1657_vm4, %v3724_v31  ;;  %v5192_v34 = vld [vmem:[%s6298_s17 + $0x20] sm:$0xff]  }
 0xf59   : > { %5040 = vmatpush3.bf16.msra.mxu1 %v3829_v33  ;;  %5041 = vmatprep.mubr.msk.bf16.mxu1 %vm5316_vm2, %v5315_v30  ;;  %v5193_v35 = vld [vmem:[%s6298_s17 + $0x28] sm:$0xff]  }
 0xf5a   : > { %5051 = vmatprep.subr.bf16.mxu1 %v5315_v30 }
 0xf5d   : > { %v3672_v36 = vpop.f32.mrb[96].mxu1 }
 0xf5e   : > { %v3726_v37 = vpack.c.bf16 %v3672_v36, %v3672_v36  ;;  %v5019_v38 = vpop.f32.mrb[97].mxu1  ;;  %v5194_v36 = vld [vmem:[%s6298_s17 + $0x30] sm:$0xff]  }
 0xf5f   : > { %v3675_v39 = vpop.f32.mrb[98].mxu1  ;;  %v4530_v38 = vld [vmem:[%s6297_s16 + $0x1] ss:$0 sm:$0xff] }
 0xf60   : > { %v5020_v40 = vpop.f32.mrb[99].mxu1  ;;  %5042 = vmatmul.mubr.msk.bf16.vlgmr.msra.gmra.mrb[104].mxu1 %vm1657_vm4, %v3726_v37  ;;  %v5195_v37 = vld [vmem:[%s6298_s17 + $0x38] sm:$0xff]  }
 0xf61   : > { %5055 = vmatprep.mubr.msk.bf16.mxu1 %vm5316_vm2, %v5315_v30  ;;  %5052 = vmatpush3.bf16.msra.mxu1 %v5190_v26  ;;  %v5197_v26 = vld [vmem:[%s6302_s21 + $0x8] sm:$0xff]  }
 0xf62   : > { %5053 = vmatprep.subr.bf16.mxu1 %v5315_v30 }
 0xf65   : > { %v3626_v42 = vpop.f32.mrb[80].mxu0 }
 0xf66   : > { %v3725_v43 = vpack.c.bf16 %v3626_v42, %v3626_v42  ;;  %v5013_v44 = vpop.f32.mrb[81].mxu0 }
 0xf67   : > { %v3629_v46 = vpop.f32.mrb[82].mxu0 }
 0xf68   : > { %v5014_v47 = vpop.f32.mrb[83].mxu0  ;;  %5036 = vmatmul.mubr.msk.bf16.vlgmr.msra.gmra.mrb[88].mxu0 %vm1657_vm4, %v3725_v43 }
 0xf69   : > { %5046 = vmatpush3.bf16.msra.mxu0 %v3875_v45  ;;  %5047 = vmatprep.mubr.msk.bf16.mxu0 %vm5316_vm2, %v5315_v30 }
 0xf6a   : > { %5059 = vmatprep.subr.bf16.mxu0 %v5315_v30 }
 0xf6d   : > { %v3718_v48 = vpop.f32.mrb[84].mxu0 }
 0xf6e   : > { %v3727_v49 = vpack.c.bf16 %v3718_v48, %v3718_v48  ;;  %v5025_v50 = vpop.f32.mrb[85].mxu0 }
 0xf6f   : > { %v3721_v51 = vpop.f32.mrb[86].mxu0 }
 0xf70   : > { %v5026_v52 = vpop.f32.mrb[87].mxu0  ;;  %5048 = vmatmul.mubr.msk.bf16.vlgmr.msra.gmra.mrb[92].mxu0 %vm1657_vm4, %v3727_v49 }
 0xf71   : > { %5067 = vmatprep.mubr.msk.bf16.mxu0 %vm5316_vm2, %v5315_v30  ;;  %5060 = vmatpush3.bf16.msra.mxu0 %v5192_v34 }
 0xf72   : > { %5061 = vmatprep.subr.bf16.mxu0 %v5315_v30 }
 0xf75   : > { %5062 = vmatpush3.bf16.msra.mxu0 %v5193_v35 }
 0xf76   : > { %5063 = vmatprep.subr.bf16.mxu0 %v5315_v30 }
 0xf79   : > { %5064 = vmatpush3.bf16.msra.mxu0 %v5194_v36 }
 0xf7a   : > { %5065 = vmatprep.subr.bf16.mxu0 %v5315_v30 }
 0xf7d   : > { %5066 = vmatpush3.bf16.msra.mxu0 %v5195_v37 }
0x102b   : > { %v3773_v53 = vpop.f32.mrb[100].mxu1 }
0x102c   : > { %v5031_v54 = vpop.f32.mrb[101].mxu1  ;;  %v3917_v0 = vsel %vm859_vm1, %v3773_v53, 0.0 }
0x102d   : > { %v3776_v55 = vpop.f32.mrb[102].mxu1 }
0x102e   : > { %v5032_v56 = vpop.f32.mrb[103].mxu1 }
0x1033   : > { %v3865_v57 = vpop.f32.mrb[104].mxu1 }
0x1034   : > { %v5043_v59 = vpop.f32.mrb[105].mxu1  ;;  %v3920_v5 = vsel %vm859_vm1, %v3865_v57, 0.0 }
0x1035   : > { %v3868_v60 = vpop.f32.mrb[106].mxu1 }
0x1036   : > { %v5044_v61 = vpop.f32.mrb[107].mxu1 }
0x103b   : > { %v3819_v62 = vpop.f32.mrb[88].mxu0 }
0x103c   : > { %v3918_v1 = vsel %vm859_vm1, %v3819_v62, 0.0  ;;  %v5037_v2 = vpop.f32.mrb[89].mxu0 }
0x103d   : > { %v3919_v3 = vadd.f32 %v3918_v1, %v3917_v0  ;;  %v3822_v4 = vpop.f32.mrb[90].mxu0 }
0x103e   : > { %v5038_v6 = vpop.f32.mrb[91].mxu0 }
0x103f   : > { %v3921_v7 = vadd.f32 %v3920_v5, %v3919_v3 }
0x1043   : > { %v3911_v8 = vpop.f32.mrb[92].mxu0 }
0x1044   : > { %v3922_v9 = vsel %vm859_vm1, %v3911_v8, 0.0  ;;  %v5049_v10 = vpop.f32.mrb[93].mxu0  ;;  %v4543_v8 = vld [vmem:[%s6299_s18 + $0x1] ss:$0 sm:$0xff] }
0x1045   : > { %v3923_v11 = vadd.f32 %v3922_v9, %v3921_v7  ;;  %v3914_v58 = vpop.f32.mrb[94].mxu0 }
0x1046   : > { %v5050_v12 = vpop.f32.mrb[95].mxu0 }
0x1047   : > { %v3924_v14 = vadd.f32 %v3923_v11, %v5880_v19  ;;  %v5191_v19 = vld [vmem:[%s6296_s15 + $0x18] sm:$0xff]  }
0x1048   : > { %5054 = vmatpush3.bf16.msra.mxu1 %v5191_v19 }
0x1049   : > { %v6168_v15 = vadd.f32 %v4520_v13, %v3924_v14  ;;  %5071 = vmatprep.subr.bf16.mxu1 %v5315_v30 }
0x104b   : > { %v3938_v16 = vsel %vm859_vm1, %v6168_v15, 0.0 }
0x104c   : > { %3939 = vadd.xlane.f32.xlu0 %v3938_v16 }
0x10d9   : > { %v3940_v20 = vpop.xlane.xlu0 %3939 }
0x10da   : > { %v3941_v23 = vmul.f32 0.03125, %v3940_v20 }
0x10dc   : > { %v3942_v24 = vsub.f32 %v6168_v15, %v3941_v23 }
0x10de   : > { %v3943_v25 = vmul.f32 %v3942_v24, %v3942_v24 }
0x10e0   : > { %v3944_v17 = vsel %vm859_vm1, %v3943_v25, 0.0 }
0x10e1   : > { %3945 = vadd.xlane.f32.xlu1 %v3944_v17  ;;  %v5196_v17 = vld [vmem:[%s6302_s21] sm:$0xff]  }
0x116e   : > { %v3946_v22 = vpop.xlane.xlu1 %3945 }
0x116f   : > { %v3947_v63 = vmul.f32 0.03125, %v3946_v22 }
0x1171   : > { %v3948_v27 = vadd.f32 1e-12, %v3947_v63 }
0x1173   : > { %5240 = vrsqrt.f32 %v3948_v27  ;;  %v4146_v27 = vld [vmem:[%s6300_s19] sm:$0x1] }
0x117d   : > { %v5241_v28 = vpop.eup %5240 }
0x117e   : > { %v3950_v18 = vmul.f32 %v5241_v28, %v3942_v24 }
0x1180   : > { %v3957_v31 = vmul.f32 %v4523_v21, %v3950_v18  ;;  %v4147_v21 = vld [vmem:[%s6301_s20] sm:$0x1] }
0x1182   : > { %v3964_v32 = vadd.f32 %v4524_v29, %v3957_v31  ;;  %v4169_v31 = vld [vmem:[%s6303_s22] sm:$0x1] }
0x1184   : > { %v3965_v33 = vpack.c.bf16 %v3964_v32, %v3964_v32 }
0x1186   : > { %5056 = vmatmul.mubr.msk.bf16.vlgmr.msra.gmra.mrb[108].mxu1 %vm945_vm3, %v3965_v33 }
0x1187   : > { %5075 = vmatprep.mubr.msk.bf16.mxu1 %vm5316_vm2, %v5315_v30  ;;  %5072 = vmatpush3.bf16.msra.mxu1 %v5196_v17 }
0x1188   : > { %5073 = vmatprep.subr.bf16.mxu1 %v5315_v30 }
0x118b   : > { %5074 = vmatpush3.bf16.msra.mxu1 %v5197_v26 }
0x1259   : > { %v4028_v39 = vpop.f32.mrb[108].mxu1 }
0x125a   : > { %v4029_v40 = vadd.f32 %v4530_v38, %v4028_v39  ;;  %v5057_v41 = vpop.f32.mrb[109].mxu1 }
0x125b   : > { %v4031_v42 = vpop.f32.mrb[110].mxu1 }
0x125c   : > { %v4035_v43 = vmul.f32 0.70710677, %v4029_v40  ;;  %v5058_v44 = vpop.f32.mrb[111].mxu1  ;;  %v4034_v4 = vmul.f32 0.5, %v4029_v40 }
0x125e   : > { %v4036_v45 = vand.u32 2147483647, %v4035_v43  ;;  %vm4055_vm11 = vcmp.ge.f32.partialorder %v4035_v43, 0.0 }
0x1260   : > { %v4037_v46 = vmul.f32 0.3275911, %v4036_v45  ;;  %v4049_v48 = vsub.f32 0.0, %v4036_v45 }
0x1262   : > { %v4038_v47 = vadd.f32 1.0, %v4037_v46  ;;  %v4050_v50 = vmul.f32 %v4049_v48, %v4036_v45 }
0x1264   : > { %5242 = vrcp.f32 %v4038_v47  ;;  %v4051_v53 = vmul.f32 1.442695, %v4050_v50 }
0x1266   : > { %5244 = vpow2.f32 %v4051_v53 }
0x126e   : > { %v5243_v49 = vpop.eup %5242 }
0x126f   : > { %v4040_v51 = vmul.f32 1.0614054, %v5243_v49 }
0x1270   : > { %v5245_v62 = vpop.eup %5244 }
0x1271   : > { %v4041_v52 = vadd.f32 -1.4531521, %v4040_v51 }
0x1273   : > { %v4042_v54 = vmul.f32 %v5243_v49, %v4041_v52 }
0x1275   : > { %v4043_v55 = vadd.f32 1.4214138, %v4042_v54 }
0x1277   : > { %v4044_v56 = vmul.f32 %v5243_v49, %v4043_v55 }
0x1279   : > { %v4045_v57 = vadd.f32 -0.28449672, %v4044_v56 }
0x127b   : > { %v4046_v59 = vmul.f32 %v5243_v49, %v4045_v57 }
0x127d   : > { %v4047_v60 = vadd.f32 0.2548296, %v4046_v59 }
0x127f   : > { %v4048_v61 = vmul.f32 %v5243_v49, %v4047_v60 }
0x1281   : > { %v4053_v0 = vmul.f32 %v5245_v62, %v4048_v61 }
0x1283   : > { %v4054_v1 = vsub.f32 1.0, %v4053_v0 }
0x1285   : > { %v4056_v2 = vsub.f32 0.0, %v4054_v1 }
0x1287   : > { %v4057_v3 = vsel %vm4055_vm11, %v4054_v1, %v4056_v2 }
0x1288   : > { %v4058_v5 = vadd.f32 1.0, %v4057_v3 }
0x128a   : > { %v4059_v6 = vmul.f32 %v4058_v5, %v4034_v4 }
0x128c   : > { %v4060_v7 = vpack.c.bf16 %v4059_v6, %v4059_v6 }
0x128e   : > { %5068 = vmatmul.mubr.msk.bf16.vlgmr.msra.gmra.mrb[96].mxu0 %vm813_vm0, %v4060_v7 }
0x1361   : > { %v4139_v9 = vpop.f32.mrb[96].mxu0 }
0x1362   : > { %v4140_v10 = vadd.f32 %v4543_v8, %v4139_v9  ;;  %v5069_v11 = vpop.f32.mrb[97].mxu0 }
0x1363   : > { %v4142_v58 = vpop.f32.mrb[98].mxu0 }
0x1364   : > { %v5070_v12 = vpop.f32.mrb[99].mxu0  ;;  %v4145_v13 = vadd.f32 %v4140_v10, %v6168_v15 }
0x1366   : > { %v4149_v14 = vsel %vm4148_vm12, %v4145_v13, 0.0 }
0x1367   : > { %4150 = vadd.xlane.f32.xlu0 %v4149_v14 }
0x13f4   : > { %v4151_v16 = vpop.xlane.xlu0 %4150 }
0x13f5   : > { %v4152_v20 = vmul.f32 0.03125, %v4151_v16 }
0x13f7   : > { %v4153_v23 = vsub.f32 %v4145_v13, %v4152_v20 }
0x13f9   : > { %v4154_v24 = vmul.f32 %v4153_v23, %v4153_v23 }
0x13fb   : > { %v4155_v25 = vsel %vm4148_vm12, %v4154_v24, 0.0 }
0x13fc   : > { %4156 = vadd.xlane.f32.xlu1 %v4155_v25 }
0x1489   : > { %v4157_v15 = vpop.xlane.xlu1 %4156 }
0x148a   : > { %v4158_v19 = vmul.f32 0.03125, %v4157_v15 }
0x148c   : > { %v4159_v22 = vadd.f32 1e-12, %v4158_v19 }
0x148e   : > { %5246 = vrsqrt.f32 %v4159_v22 }
0x1498   : > { %v5247_v63 = vpop.eup %5246 }
0x1499   : > { %v4161_v28 = vmul.f32 %v5247_v63, %v4153_v23 }
0x149b   : > { %v4162_v18 = vmul.f32 %v4161_v28, %v4146_v27 }
0x149d   : > { %v4163_v29 = vadd.f32 %v4162_v18, %v4147_v21 }
0x149f   : > { %v4164_v30 = vpack.c.bf16 %v4163_v29, %v4163_v29 }
0x14a1   : > { %5076 = vmatmul.mubr.msk.bf16.vlgmr.msra.gmra.mrb[112].mxu1 %vm945_vm3, %v4164_v30 }
0x1574   : > { %v4219_v32 = vpop.f32.mrb[112].mxu1 }
0x1575   : > { %v4220_v33 = vadd.f32 %v4219_v32, %v4169_v31  ;;  %v5077_v34 = vpop.f32.mrb[113].mxu1 }
0x1576   : > { %v4222_v35 = vpop.f32.mrb[114].mxu1 }
0x1577   : > { %5248 = vtanh.f32 %v4220_v33  ;;  %v5078_v36 = vpop.f32.mrb[115].mxu1 }
0x1581   : > { %v5249_v37 = vpop.eup %5248 }
0x1582   : > { %4226 = vst.msk [vmem:[%s702_s3] sm:$0x1] %vm4148_vm12, %v5249_v37 }
0x1583   : > { %5263 = shalt.err (!%p5260_p3)
}
0x1584   : > { %s5264_s29 = scalar_lea.hbm %s6238_s2, 16  ;;  %s5268_s25 = scalar_lea.hbm %s6349_s1, 32 }
0x1585   : > { %p5265_p4 = scmp.ne.s32.totalorder %s6238_s2, %s5264_s29  ;;  %p5269_p9 = scmp.lt.u32.totalorder %s6238_s2, %s6349_s1 }
0x1586   : > { %p5270_p10 = scmp.lt.u32.totalorder %s5268_s25, %s5264_s29  ;;  %p5272_p12 = scmp.lt.u32.totalorder %s5264_s29, %s6238_s2 }
0x1587   : > { %p5266_p7 = pnand %p5265_p4, %p5477_p5 }
0x1588   : > { %p5271_p11 = por %p5270_p10, %p5269_p9 }
0x1589   : > { %p5267_p8 = pneg %p5266_p7 }
0x158a   : > { %p5273_p13 = por %p5272_p12, %p5271_p11 }
0x158c   : > { %p5274_p0 = pnand %p5273_p13, %p5267_p8 }
0x158e   : > { %5277 = shalt.err (!%p5274_p0)
}
0x158f   : > { %5079 = dma.vmem_to_hbm [thread:$0]  (%p5477_p5), %s6240_s24, 16, %s6238_s2, %s4228_s26  }
0x1590 PF: > { %s6350_s4 = sld [smem:[#allocation7_spill]]  ;;  %s6351_s23 = sld [smem:[#allocation5_spill]] }
0x1596   : > { %p5085_p1 = scmp.ge.s32.totalorder %s6350_s4, 2  ;;  %s4252_s3 = sand.u32 1, %s6351_s23  }
0x1597   : > { %s4253_s5 = scalar_lea.sflag [#allocation3], %s4252_s3 }
0x1598   : > { %p5082_p2 = pnand %p5085_p1, %p5481_p6 }
0x159a   : > { %5295 = dma.done.wait (!%p5082_p2), %s4253_s5, 16  }
0x159b   : > { %5297 = vsyncadd (!%p5082_p2), %s4253_s5, 4294967280  ;;  %s6353_s25 = sld [smem:[#allocation8_spill]]  ;;  %s6354_s29 = sld [smem:[#allocation6_spill]] }
0x159c   : > { %s6355_s24 = sld [smem:[#allocation9_spill]]  ;;  %s6356_s4 = smov %s5304_s30 }
0x15a1   : > { %p33_p3 = scmp.ge.s32.totalorder %s6353_s25, 4   ;;  %s6357_s30 = smov %s6354_s29 }
0x15a3   :  { %35 = sbr.rel (!%p33_p3) target bundleno = 13 (0xd), region = 163 }
0x15aa   :  { %4257 = vsyncpa [#allocation3], 1 }
0x15ab   :  { %4259 = vsyncpa [#allocation3 + $0x1], 1 }

</bundles_post_ra>
